<compile_context>
chip_gen: v7x
topology: tpu7x:2x2x1
jax: 0.10.0
libtpu: 0.0.40
codegen_flags: <defaults>
</compile_context>

<pallas_src>
import numpy as np
import jax
import jax.numpy as jnp
from jax import lax
from jax.experimental import pallas as pl
from jax.experimental.pallas import tpu as pltpu

# ----------------------------- problem sizes -------------------------------
N, CIN, COUT, H, W = 2, 4, 32, 16, 16      # batch, in-ch, out-ch, spatial
HW = H * W                                 # 256 -> lane axis
RED = 16                                   # CBAM reduction ratio
CR = COUT // RED                           # MLP hidden width (2)
KS, PAD = 3, 1                             # head conv
K2 = KS * KS * CIN                         # im2col rows (36)
K2A = K2 + 1                               # + ones row for the folded BN bias (37)
SKS, SPAD = 7, 3                           # spatial-attention conv
NTAP = SKS * SKS                           # 49
EPS = 1e-5


# --------------------------- fused AttnConv kernel --------------------------
def attn_conv_kernel(patch_ref, wc_ref, mlp_ref, wm_ref, spb_ref, o_ref):
    # ---- head 3x3 conv + BatchNorm as ONE im2col matmul (bias via ones row) ----
    y = jnp.dot(wc_ref[...], patch_ref[0],
                preferred_element_type=jnp.float32,
                precision=lax.Precision.HIGHEST)                  # (COUT, HW)

    # ---- CBAM channel attention, MLP evaluated on the VPU (no tiny MXU dots) ---
    w1 = mlp_ref[:, 0:CR]                                         # (COUT, CR)
    w2t = mlp_ref[:, CR:2 * CR]                                   # (COUT, CR)
    b2c = mlp_ref[:, 2 * CR:2 * CR + 1]                           # (COUT, 1)
    b1r = mlp_ref[0:1, 2 * CR + 1:3 * CR + 1]                     # (1, CR)

    avg = jnp.mean(y, axis=1, keepdims=True)                      # (COUT, 1)
    mx = jnp.max(y, axis=1, keepdims=True)                        # (COUT, 1)

    def mlp(v):                                                   # v: (COUT, 1)
        h = jnp.sum(w1 * v, axis=0, keepdims=True) + b1r          # (1, CR)
        h = jnp.maximum(h, 0.0)
        return jnp.sum(w2t * h, axis=1, keepdims=True) + b2c      # (COUT, 1)

    catt = jax.nn.sigmoid(mlp(avg) + mlp(mx))                     # (COUT, 1)
    y2 = y * catt                                                 # (COUT, HW)

    # ---- CBAM spatial attention: channel max/mean -> 7x7 conv -> BN -> sigmoid --
    cmax = jnp.max(y2, axis=0, keepdims=True)                     # (1, HW)
    cmean = jnp.mean(y2, axis=0, keepdims=True)                   # (1, HW)
    maps = jnp.concatenate([cmax, cmean], axis=0)                 # (2, HW)

    # 49 taps via lane rolls (XLU) * mask-and-scale-folded weight table (VMEM).
    # 4 independent accumulators break the serial add chain; rows collapsed once.
    accs = [jnp.zeros((2, HW), jnp.float32) for _ in range(4)]
    for dy in range(SKS):
        for dx in range(SKS):
            t = dy * SKS + dx
            s = (dy - SPAD) * W + (dx - SPAD)
            rolled = maps if s == 0 else pltpu.roll(maps, (-s) % HW, axis=1)
            accs[t & 3] = accs[t & 3] + rolled * wm_ref[t]
    tot = (accs[0] + accs[1]) + (accs[2] + accs[3])               # (2, HW)
    sconv = jnp.sum(tot, axis=0, keepdims=True)                   # (1, HW)

    satt = jax.nn.sigmoid(sconv + spb_ref[0])                     # (1, HW)
    o_ref[0] = y2 * satt                                          # lane-dense store


# ------------------------------ public wrapper -------------------------------
@jax.jit
def attn_conv(x_nchw, conv_w, bn_s, bn_b, w1, b1, w2, b2, sw, sp_scale, sp_bias):
    # Fold the BatchNorm scale into the conv weights and the BN bias into an extra
    # im2col "ones" row -> the whole head conv+BN is one (COUT,37)x(37,HW) matmul.
    wc = (conv_w * bn_s[:, None, None, None]).reshape(COUT, K2)      # (COUT, 36)
    wc_aug = jnp.concatenate([wc, bn_b[:, None]], axis=1)            # (COUT, 37)

    # im2col of the NCHW input: row order (c, dy, dx) matches wc's flattening.
    xp = jnp.pad(x_nchw, ((0, 0), (0, 0), (PAD, PAD), (PAD, PAD)))
    cols = [xp[:, :, dy:dy + H, dx:dx + W] for dy in range(KS) for dx in range(KS)]
    patches = jnp.stack(cols, axis=2).reshape(N, K2, HW)             # (N, 36, 256)
    patches_aug = jnp.concatenate(
        [patches, jnp.ones((N, 1, HW), jnp.float32)], axis=1)        # (N, 37, 256)

    # Channel-attention MLP params packed into a single small VMEM tile (COUT, 8):
    #   cols [0:CR]        = W1            (COUT, CR)
    #   cols [CR:2CR]      = W2^T          (COUT, CR)
    #   col  [2CR]         = b2            (COUT,)
    #   row0 [2CR+1:3CR+1] = b1            (CR,)
    mlpp = jnp.zeros((COUT, 8), jnp.float32)
    mlpp = mlpp.at[:, 0:CR].set(w1)
    mlpp = mlpp.at[:, CR:2 * CR].set(w2.T)
    mlpp = mlpp.at[:, 2 * CR].set(b2)
    mlpp = mlpp.at[0, 2 * CR + 1:3 * CR + 1].set(b1)

    # 7x7 spatial-attention weights with the halo boundary masks AND the folded BN
    # scale baked into a per-lane table wm[t, c, q] = sw[dy,dx,c] * valid(t,q) * scale.
    hq = jnp.arange(HW) // W
    wq = jnp.arange(HW) % W
    dyp = jnp.arange(SKS) - SPAD
    dxp = jnp.arange(SKS) - SPAD
    vh = ((hq[None, :] + dyp[:, None]) >= 0) & ((hq[None, :] + dyp[:, None]) < H)
    vw = ((wq[None, :] + dxp[:, None]) >= 0) & ((wq[None, :] + dxp[:, None]) < W)
    valid = (vh[:, None, :] & vw[None, :, :]).reshape(NTAP, HW)       # (49, HW)
    wm = (sw.reshape(NTAP, 2)[:, :, None]
          * valid[:, None, :].astype(jnp.float32)
          * jnp.asarray(sp_scale, jnp.float32))                       # (49, 2, HW)
    spb = jnp.reshape(jnp.asarray(sp_bias, jnp.float32), (1,))        # folded BN bias

    out_flat = pl.pallas_call(
        attn_conv_kernel,
        out_shape=jax.ShapeDtypeStruct((N, COUT, HW), jnp.float32),
        grid=(N,),
        in_specs=[
            pl.BlockSpec((1, K2A, HW), lambda n: (n, 0, 0)),          # im2col patches
            pl.BlockSpec((COUT, K2A), lambda n: (0, 0)),              # folded conv W | bias
            pl.BlockSpec((COUT, 8), lambda n: (0, 0)),                # packed MLP params
            pl.BlockSpec((NTAP, 2, HW), lambda n: (0, 0, 0)),         # masked 7x7 weight table
            pl.BlockSpec(memory_space=pltpu.MemorySpace.SMEM),        # spatial BN bias (1,)
        ],
        out_specs=pl.BlockSpec((1, COUT, HW), lambda n: (n, 0, 0)),
        compiler_params=pltpu.CompilerParams(
            dimension_semantics=("parallel",)),
    )(patches_aug, wc_aug, mlpp, wm, spb)

    return out_flat.reshape(N, COUT, H, W)                            # NCHW


# ------------------------- pure-JAX reference (check) ------------------------
def ref_forward(x, conv_w, bn_s, bn_b, w1, b1, w2, b2, sw, sp_scale, sp_bias):
    hp = lax.Precision.HIGHEST
    y = lax.conv_general_dilated(x, conv_w, (1, 1), 'SAME',
                                 dimension_numbers=('NCHW', 'OIHW', 'NCHW'),
                                 precision=hp)
    y = y * bn_s[None, :, None, None] + bn_b[None, :, None, None]
    avg = jnp.mean(y, axis=(2, 3))
    mx = jnp.max(y, axis=(2, 3))
    mlp = lambda v: jnp.dot(jnp.maximum(jnp.dot(v, w1, precision=hp) + b1, 0.0),
                            w2, precision=hp) + b2
    catt = jax.nn.sigmoid(mlp(avg) + mlp(mx))
    y2 = y * catt[:, :, None, None]
    comp = jnp.stack([jnp.max(y2, axis=1), jnp.mean(y2, axis=1)], axis=1)  # (N,2,H,W)
    sw_oihw = jnp.transpose(sw, (2, 0, 1))[None]                           # (1,2,7,7)
    s = lax.conv_general_dilated(comp, sw_oihw, (1, 1), 'SAME',
                                 dimension_numbers=('NCHW', 'OIHW', 'NCHW'),
                                 precision=hp)
    satt = jax.nn.sigmoid(s[:, 0] * sp_scale + sp_bias)
    return y2 * satt[:, None, :, :]


# ---------------------------------- main ------------------------------------
if __name__ == "__main__":
    key = jax.random.PRNGKey(0)
    ks = jax.random.split(key, 12)

    # input (PyTorch NCHW convention)
    x = jax.random.normal(ks[0], (N, CIN, H, W), jnp.float32)

    # head conv weight (OIHW) + BatchNorm(out_chan) inference params
    conv_w = jax.random.normal(ks[1], (COUT, CIN, KS, KS), jnp.float32) * 0.2
    gamma = 1.0 + 0.1 * jax.random.normal(ks[2], (COUT,), jnp.float32)
    beta = 0.1 * jax.random.normal(ks[3], (COUT,), jnp.float32)
    rmean = 0.1 * jax.random.normal(ks[4], (COUT,), jnp.float32)
    rvar = jnp.abs(jax.random.normal(ks[5], (COUT,), jnp.float32)) * 0.5 + 0.5
    bn_s = gamma / jnp.sqrt(rvar + EPS)
    bn_b = beta - rmean * bn_s

    # channel-attention MLP (Linear C->C/r, ReLU, Linear C/r->C, with biases)
    w1 = jax.random.normal(ks[6], (COUT, CR), jnp.float32) * 0.3
    b1 = 0.1 * jax.random.normal(ks[7], (CR,), jnp.float32)
    w2 = jax.random.normal(ks[8], (CR, COUT), jnp.float32) * 0.3
    b2 = 0.1 * jax.random.normal(ks[9], (COUT,), jnp.float32)

    # spatial attention: Conv2d(2->1, 7x7, bias=True) + BatchNorm2d(1), folded
    sw = jax.random.normal(ks[10], (SKS, SKS, 2), jnp.float32) * 0.1  # [...,0]=max, [...,1]=mean
    sconv_bias = 0.05
    g2, bt2, m2, v2 = 1.05, -0.02, 0.01, 0.8
    sp_scale = float(g2 / np.sqrt(v2 + EPS))
    sp_bias = float((sconv_bias - m2) * sp_scale + bt2)

    out = attn_conv(x, conv_w, bn_s, bn_b, w1, b1, w2, b2, sw, sp_scale, sp_bias)
    out = jax.block_until_ready(out)

    ref = ref_forward(x, conv_w, bn_s, bn_b, w1, b1, w2, b2, sw, sp_scale, sp_bias)
    ref = jax.block_until_ready(ref)

    assert out.shape == (N, COUT, H, W)
    err = float(jnp.max(jnp.abs(out - ref)))
    # Head conv runs at precision=HIGHEST in both paths, MLP + spatial conv are
    # exact f32 VPU math, so only summation-order / transcendental differences remain.
    if not np.isfinite(err) or err > 5e-3:
        raise AssertionError(f"mismatch vs reference: max abs err = {err}")

    print("KERNEL_OK")
</pallas_src>

<mosaic_0001>
module attributes {stable_mosaic.version = 11 : i64} {
  func.func @attn_conv_kernel(%arg0: i32, %arg1: memref<1x37x256xf32, #tpu.memory_space<vmem>>, %arg2: memref<32x37xf32, #tpu.memory_space<vmem>>, %arg3: memref<32x8xf32, #tpu.memory_space<vmem>>, %arg4: memref<49x2x256xf32, #tpu.memory_space<vmem>>, %arg5: memref<1xf32, #tpu.memory_space<smem>>, %arg6: memref<1x32x256xf32, #tpu.memory_space<vmem>>) attributes {dimension_semantics = [#tpu.dimension_semantics<parallel>], iteration_bounds = array<i64: 2>, scalar_prefetch = 0 : i64, scratch_operands = 0 : i64, tpu.core_type = #tpu.core_type<tc>, window_params = [{transform_indices = @transform_0, window_bounds = array<i64: 1, 37, 256>}, {pipeline_mode = #tpu.pipeline_mode<synchronous>, transform_indices = @transform_1, window_bounds = array<i64: 32, 37>}, {pipeline_mode = #tpu.pipeline_mode<synchronous>, transform_indices = @transform_2, window_bounds = array<i64: 32, 8>}, {pipeline_mode = #tpu.pipeline_mode<synchronous>, transform_indices = @transform_3, window_bounds = array<i64: 49, 2, 256>}, {transform_indices = @transform_4, window_bounds = array<i64: 1>}, {transform_indices = @transform_5, window_bounds = array<i64: 1, 32, 256>}]} {
    %c0 = arith.constant 0 : index
    %c0_0 = arith.constant 0 : index
    %0 = vector.load %arg2[%c0, %c0_0] : memref<32x37xf32, #tpu.memory_space<vmem>>, vector<32x37xf32>
    %c0_1 = arith.constant 0 : index
    %c0_2 = arith.constant 0 : index
    %c0_3 = arith.constant 0 : index
    %1 = vector.load %arg1[%c0_1, %c0_2, %c0_3] : memref<1x37x256xf32, #tpu.memory_space<vmem>>, vector<1x37x256xf32>
    %2 = vector.shape_cast %1 : vector<1x37x256xf32> to vector<37x256xf32>
    %cst = arith.constant dense<0.000000e+00> : vector<32x256xf32>
    %3 = tpu.matmul %0, %2, %cst {dimension_numbers = #tpu.dot_dimension_numbers<[1], [0], [0], [1], [0, 0, 1, 1], [], []>, precision = #tpu.contract_precision<fp32>} : vector<32x37xf32>, vector<37x256xf32>, vector<32x256xf32> -> vector<32x256xf32>
    %c0_4 = arith.constant 0 : index
    %c0_5 = arith.constant 0 : index
    %4 = vector.load %arg3[%c0_4, %c0_5] : memref<32x8xf32, #tpu.memory_space<vmem>>, vector<32x2xf32>
    %c0_6 = arith.constant 0 : index
    %c2 = arith.constant 2 : index
    %5 = vector.load %arg3[%c0_6, %c2] : memref<32x8xf32, #tpu.memory_space<vmem>>, vector<32x2xf32>
    %c0_7 = arith.constant 0 : index
    %c4 = arith.constant 4 : index
    %6 = vector.load %arg3[%c0_7, %c4] : memref<32x8xf32, #tpu.memory_space<vmem>>, vector<32x1xf32>
    %c0_8 = arith.constant 0 : index
    %c5 = arith.constant 5 : index
    %7 = vector.load %arg3[%c0_8, %c5] : memref<32x8xf32, #tpu.memory_space<vmem>>, vector<1x2xf32>
    %cst_9 = arith.constant dense<0.000000e+00> : vector<32xf32>
    %8 = vector.multi_reduction <add>, %3, %cst_9 [1] : vector<32x256xf32> to vector<32xf32>
    %9 = vector.shape_cast %8 : vector<32xf32> to vector<32x1xf32>
    %cst_10 = arith.constant 2.560000e+02 : f32
    %10 = vector.broadcast %cst_10 : f32 to vector<32x1xf32>
    %11 = arith.divf %9, %10 : vector<32x1xf32>
    %cst_11 = arith.constant dense<0xFF800000> : vector<32xf32>
    %12 = vector.multi_reduction <maximumf>, %3, %cst_11 [1] : vector<32x256xf32> to vector<32xf32>
    %13 = vector.shape_cast %12 : vector<32xf32> to vector<32x1xf32>
    %14 = vector.broadcast %11 : vector<32x1xf32> to vector<32x2xf32>
    %15 = arith.mulf %4, %14 : vector<32x2xf32>
    %cst_12 = arith.constant dense<0.000000e+00> : vector<2xf32>
    %16 = vector.multi_reduction <add>, %15, %cst_12 [0] : vector<32x2xf32> to vector<2xf32>
    %17 = vector.shape_cast %16 : vector<2xf32> to vector<1x2xf32>
    %18 = arith.addf %17, %7 : vector<1x2xf32>
    %cst_13 = arith.constant 0.000000e+00 : f32
    %19 = vector.broadcast %cst_13 : f32 to vector<1x2xf32>
    %20 = arith.maximumf %18, %19 : vector<1x2xf32>
    %21 = vector.broadcast %20 : vector<1x2xf32> to vector<32x2xf32>
    %22 = arith.mulf %5, %21 : vector<32x2xf32>
    %cst_14 = arith.constant dense<0.000000e+00> : vector<32xf32>
    %23 = vector.multi_reduction <add>, %22, %cst_14 [1] : vector<32x2xf32> to vector<32xf32>
    %24 = vector.shape_cast %23 : vector<32xf32> to vector<32x1xf32>
    %25 = arith.addf %24, %6 : vector<32x1xf32>
    %26 = vector.broadcast %13 : vector<32x1xf32> to vector<32x2xf32>
    %27 = arith.mulf %4, %26 : vector<32x2xf32>
    %cst_15 = arith.constant dense<0.000000e+00> : vector<2xf32>
    %28 = vector.multi_reduction <add>, %27, %cst_15 [0] : vector<32x2xf32> to vector<2xf32>
    %29 = vector.shape_cast %28 : vector<2xf32> to vector<1x2xf32>
    %30 = arith.addf %29, %7 : vector<1x2xf32>
    %cst_16 = arith.constant 0.000000e+00 : f32
    %31 = vector.broadcast %cst_16 : f32 to vector<1x2xf32>
    %32 = arith.maximumf %30, %31 : vector<1x2xf32>
    %33 = vector.broadcast %32 : vector<1x2xf32> to vector<32x2xf32>
    %34 = arith.mulf %5, %33 : vector<32x2xf32>
    %cst_17 = arith.constant dense<0.000000e+00> : vector<32xf32>
    %35 = vector.multi_reduction <add>, %34, %cst_17 [1] : vector<32x2xf32> to vector<32xf32>
    %36 = vector.shape_cast %35 : vector<32xf32> to vector<32x1xf32>
    %37 = arith.addf %36, %6 : vector<32x1xf32>
    %38 = arith.addf %25, %37 : vector<32x1xf32>
    %39 = arith.negf %38 : vector<32x1xf32>
    %40 = math.exp %39 : vector<32x1xf32>
    %cst_18 = arith.constant 1.000000e+00 : f32
    %41 = vector.broadcast %cst_18 : f32 to vector<32x1xf32>
    %42 = arith.addf %41, %40 : vector<32x1xf32>
    %43 = arith.divf %41, %42 : vector<32x1xf32>
    %44 = vector.broadcast %43 : vector<32x1xf32> to vector<32x256xf32>
    %45 = arith.mulf %3, %44 : vector<32x256xf32>
    %cst_19 = arith.constant dense<0xFF800000> : vector<256xf32>
    %46 = vector.multi_reduction <maximumf>, %45, %cst_19 [0] : vector<32x256xf32> to vector<256xf32>
    %47 = vector.shape_cast %46 : vector<256xf32> to vector<1x256xf32>
    %cst_20 = arith.constant dense<0.000000e+00> : vector<256xf32>
    %48 = vector.multi_reduction <add>, %45, %cst_20 [0] : vector<32x256xf32> to vector<256xf32>
    %49 = vector.shape_cast %48 : vector<256xf32> to vector<1x256xf32>
    %cst_21 = arith.constant 3.200000e+01 : f32
    %50 = vector.broadcast %cst_21 : f32 to vector<1x256xf32>
    %51 = arith.divf %49, %50 : vector<1x256xf32>
    %52 = tpu.concatenate %47, %51 in 0 : vector<1x256xf32>, vector<1x256xf32> -> vector<2x256xf32>
    %cst_22 = arith.constant 0.000000e+00 : f32
    %53 = vector.broadcast %cst_22 : f32 to vector<2x256xf32>
    %cst_23 = arith.constant 0.000000e+00 : f32
    %54 = vector.broadcast %cst_23 : f32 to vector<2x256xf32>
    %cst_24 = arith.constant 0.000000e+00 : f32
    %55 = vector.broadcast %cst_24 : f32 to vector<2x256xf32>
    %cst_25 = arith.constant 0.000000e+00 : f32
    %56 = vector.broadcast %cst_25 : f32 to vector<2x256xf32>
    %c51_i32 = arith.constant 51 : i32
    %57 = tpu.dynamic_rotate %52 by %c51_i32 dim 1 : vector<2x256xf32>, i32 -> vector<2x256xf32>
    %c0_26 = arith.constant 0 : index
    %c0_27 = arith.constant 0 : index
    %c0_28 = arith.constant 0 : index
    %58 = vector.load %arg4[%c0_26, %c0_27, %c0_28] : memref<49x2x256xf32, #tpu.memory_space<vmem>>, vector<1x2x256xf32>
    %59 = vector.shape_cast %58 : vector<1x2x256xf32> to vector<2x256xf32>
    %60 = arith.mulf %57, %59 : vector<2x256xf32>
    %61 = arith.addf %53, %60 : vector<2x256xf32>
    %c50_i32 = arith.constant 50 : i32
    %62 = tpu.dynamic_rotate %52 by %c50_i32 dim 1 : vector<2x256xf32>, i32 -> vector<2x256xf32>
    %c1 = arith.constant 1 : index
    %c0_29 = arith.constant 0 : index
    %c0_30 = arith.constant 0 : index
    %63 = vector.load %arg4[%c1, %c0_29, %c0_30] : memref<49x2x256xf32, #tpu.memory_space<vmem>>, vector<1x2x256xf32>
    %64 = vector.shape_cast %63 : vector<1x2x256xf32> to vector<2x256xf32>
    %65 = arith.mulf %62, %64 : vector<2x256xf32>
    %66 = arith.addf %54, %65 : vector<2x256xf32>
    %c49_i32 = arith.constant 49 : i32
    %67 = tpu.dynamic_rotate %52 by %c49_i32 dim 1 : vector<2x256xf32>, i32 -> vector<2x256xf32>
    %c2_31 = arith.constant 2 : index
    %c0_32 = arith.constant 0 : index
    %c0_33 = arith.constant 0 : index
    %68 = vector.load %arg4[%c2_31, %c0_32, %c0_33] : memref<49x2x256xf32, #tpu.memory_space<vmem>>, vector<1x2x256xf32>
    %69 = vector.shape_cast %68 : vector<1x2x256xf32> to vector<2x256xf32>
    %70 = arith.mulf %67, %69 : vector<2x256xf32>
    %71 = arith.addf %55, %70 : vector<2x256xf32>
    %c48_i32 = arith.constant 48 : i32
    %72 = tpu.dynamic_rotate %52 by %c48_i32 dim 1 : vector<2x256xf32>, i32 -> vector<2x256xf32>
    %c3 = arith.constant 3 : index
    %c0_34 = arith.constant 0 : index
    %c0_35 = arith.constant 0 : index
    %73 = vector.load %arg4[%c3, %c0_34, %c0_35] : memref<49x2x256xf32, #tpu.memory_space<vmem>>, vector<1x2x256xf32>
    %74 = vector.shape_cast %73 : vector<1x2x256xf32> to vector<2x256xf32>
    %75 = arith.mulf %72, %74 : vector<2x256xf32>
    %76 = arith.addf %56, %75 : vector<2x256xf32>
    %c47_i32 = arith.constant 47 : i32
    %77 = tpu.dynamic_rotate %52 by %c47_i32 dim 1 : vector<2x256xf32>, i32 -> vector<2x256xf32>
    %c4_36 = arith.constant 4 : index
    %c0_37 = arith.constant 0 : index
    %c0_38 = arith.constant 0 : index
    %78 = vector.load %arg4[%c4_36, %c0_37, %c0_38] : memref<49x2x256xf32, #tpu.memory_space<vmem>>, vector<1x2x256xf32>
    %79 = vector.shape_cast %78 : vector<1x2x256xf32> to vector<2x256xf32>
    %80 = arith.mulf %77, %79 : vector<2x256xf32>
    %81 = arith.addf %61, %80 : vector<2x256xf32>
    %c46_i32 = arith.constant 46 : i32
    %82 = tpu.dynamic_rotate %52 by %c46_i32 dim 1 : vector<2x256xf32>, i32 -> vector<2x256xf32>
    %c5_39 = arith.constant 5 : index
    %c0_40 = arith.constant 0 : index
    %c0_41 = arith.constant 0 : index
    %83 = vector.load %arg4[%c5_39, %c0_40, %c0_41] : memref<49x2x256xf32, #tpu.memory_space<vmem>>, vector<1x2x256xf32>
    %84 = vector.shape_cast %83 : vector<1x2x256xf32> to vector<2x256xf32>
    %85 = arith.mulf %82, %84 : vector<2x256xf32>
    %86 = arith.addf %66, %85 : vector<2x256xf32>
    %c45_i32 = arith.constant 45 : i32
    %87 = tpu.dynamic_rotate %52 by %c45_i32 dim 1 : vector<2x256xf32>, i32 -> vector<2x256xf32>
    %c6 = arith.constant 6 : index
    %c0_42 = arith.constant 0 : index
    %c0_43 = arith.constant 0 : index
    %88 = vector.load %arg4[%c6, %c0_42, %c0_43] : memref<49x2x256xf32, #tpu.memory_space<vmem>>, vector<1x2x256xf32>
    %89 = vector.shape_cast %88 : vector<1x2x256xf32> to vector<2x256xf32>
    %90 = arith.mulf %87, %89 : vector<2x256xf32>
    %91 = arith.addf %71, %90 : vector<2x256xf32>
    %c35_i32 = arith.constant 35 : i32
    %92 = tpu.dynamic_rotate %52 by %c35_i32 dim 1 : vector<2x256xf32>, i32 -> vector<2x256xf32>
    %c7 = arith.constant 7 : index
    %c0_44 = arith.constant 0 : index
    %c0_45 = arith.constant 0 : index
    %93 = vector.load %arg4[%c7, %c0_44, %c0_45] : memref<49x2x256xf32, #tpu.memory_space<vmem>>, vector<1x2x256xf32>
    %94 = vector.shape_cast %93 : vector<1x2x256xf32> to vector<2x256xf32>
    %95 = arith.mulf %92, %94 : vector<2x256xf32>
    %96 = arith.addf %76, %95 : vector<2x256xf32>
    %c34_i32 = arith.constant 34 : i32
    %97 = tpu.dynamic_rotate %52 by %c34_i32 dim 1 : vector<2x256xf32>, i32 -> vector<2x256xf32>
    %c8 = arith.constant 8 : index
    %c0_46 = arith.constant 0 : index
    %c0_47 = arith.constant 0 : index
    %98 = vector.load %arg4[%c8, %c0_46, %c0_47] : memref<49x2x256xf32, #tpu.memory_space<vmem>>, vector<1x2x256xf32>
    %99 = vector.shape_cast %98 : vector<1x2x256xf32> to vector<2x256xf32>
    %100 = arith.mulf %97, %99 : vector<2x256xf32>
    %101 = arith.addf %81, %100 : vector<2x256xf32>
    %c33_i32 = arith.constant 33 : i32
    %102 = tpu.dynamic_rotate %52 by %c33_i32 dim 1 : vector<2x256xf32>, i32 -> vector<2x256xf32>
    %c9 = arith.constant 9 : index
    %c0_48 = arith.constant 0 : index
    %c0_49 = arith.constant 0 : index
    %103 = vector.load %arg4[%c9, %c0_48, %c0_49] : memref<49x2x256xf32, #tpu.memory_space<vmem>>, vector<1x2x256xf32>
    %104 = vector.shape_cast %103 : vector<1x2x256xf32> to vector<2x256xf32>
    %105 = arith.mulf %102, %104 : vector<2x256xf32>
    %106 = arith.addf %86, %105 : vector<2x256xf32>
    %c32_i32 = arith.constant 32 : i32
    %107 = tpu.dynamic_rotate %52 by %c32_i32 dim 1 : vector<2x256xf32>, i32 -> vector<2x256xf32>
    %c10 = arith.constant 10 : index
    %c0_50 = arith.constant 0 : index
    %c0_51 = arith.constant 0 : index
    %108 = vector.load %arg4[%c10, %c0_50, %c0_51] : memref<49x2x256xf32, #tpu.memory_space<vmem>>, vector<1x2x256xf32>
    %109 = vector.shape_cast %108 : vector<1x2x256xf32> to vector<2x256xf32>
    %110 = arith.mulf %107, %109 : vector<2x256xf32>
    %111 = arith.addf %91, %110 : vector<2x256xf32>
    %c31_i32 = arith.constant 31 : i32
    %112 = tpu.dynamic_rotate %52 by %c31_i32 dim 1 : vector<2x256xf32>, i32 -> vector<2x256xf32>
    %c11 = arith.constant 11 : index
    %c0_52 = arith.constant 0 : index
    %c0_53 = arith.constant 0 : index
    %113 = vector.load %arg4[%c11, %c0_52, %c0_53] : memref<49x2x256xf32, #tpu.memory_space<vmem>>, vector<1x2x256xf32>
    %114 = vector.shape_cast %113 : vector<1x2x256xf32> to vector<2x256xf32>
    %115 = arith.mulf %112, %114 : vector<2x256xf32>
    %116 = arith.addf %96, %115 : vector<2x256xf32>
    %c30_i32 = arith.constant 30 : i32
    %117 = tpu.dynamic_rotate %52 by %c30_i32 dim 1 : vector<2x256xf32>, i32 -> vector<2x256xf32>
    %c12 = arith.constant 12 : index
    %c0_54 = arith.constant 0 : index
    %c0_55 = arith.constant 0 : index
    %118 = vector.load %arg4[%c12, %c0_54, %c0_55] : memref<49x2x256xf32, #tpu.memory_space<vmem>>, vector<1x2x256xf32>
    %119 = vector.shape_cast %118 : vector<1x2x256xf32> to vector<2x256xf32>
    %120 = arith.mulf %117, %119 : vector<2x256xf32>
    %121 = arith.addf %101, %120 : vector<2x256xf32>
    %c29_i32 = arith.constant 29 : i32
    %122 = tpu.dynamic_rotate %52 by %c29_i32 dim 1 : vector<2x256xf32>, i32 -> vector<2x256xf32>
    %c13 = arith.constant 13 : index
    %c0_56 = arith.constant 0 : index
    %c0_57 = arith.constant 0 : index
    %123 = vector.load %arg4[%c13, %c0_56, %c0_57] : memref<49x2x256xf32, #tpu.memory_space<vmem>>, vector<1x2x256xf32>
    %124 = vector.shape_cast %123 : vector<1x2x256xf32> to vector<2x256xf32>
    %125 = arith.mulf %122, %124 : vector<2x256xf32>
    %126 = arith.addf %106, %125 : vector<2x256xf32>
    %c19_i32 = arith.constant 19 : i32
    %127 = tpu.dynamic_rotate %52 by %c19_i32 dim 1 : vector<2x256xf32>, i32 -> vector<2x256xf32>
    %c14 = arith.constant 14 : index
    %c0_58 = arith.constant 0 : index
    %c0_59 = arith.constant 0 : index
    %128 = vector.load %arg4[%c14, %c0_58, %c0_59] : memref<49x2x256xf32, #tpu.memory_space<vmem>>, vector<1x2x256xf32>
    %129 = vector.shape_cast %128 : vector<1x2x256xf32> to vector<2x256xf32>
    %130 = arith.mulf %127, %129 : vector<2x256xf32>
    %131 = arith.addf %111, %130 : vector<2x256xf32>
    %c18_i32 = arith.constant 18 : i32
    %132 = tpu.dynamic_rotate %52 by %c18_i32 dim 1 : vector<2x256xf32>, i32 -> vector<2x256xf32>
    %c15 = arith.constant 15 : index
    %c0_60 = arith.constant 0 : index
    %c0_61 = arith.constant 0 : index
    %133 = vector.load %arg4[%c15, %c0_60, %c0_61] : memref<49x2x256xf32, #tpu.memory_space<vmem>>, vector<1x2x256xf32>
    %134 = vector.shape_cast %133 : vector<1x2x256xf32> to vector<2x256xf32>
    %135 = arith.mulf %132, %134 : vector<2x256xf32>
    %136 = arith.addf %116, %135 : vector<2x256xf32>
    %c17_i32 = arith.constant 17 : i32
    %137 = tpu.dynamic_rotate %52 by %c17_i32 dim 1 : vector<2x256xf32>, i32 -> vector<2x256xf32>
    %c16 = arith.constant 16 : index
    %c0_62 = arith.constant 0 : index
    %c0_63 = arith.constant 0 : index
    %138 = vector.load %arg4[%c16, %c0_62, %c0_63] : memref<49x2x256xf32, #tpu.memory_space<vmem>>, vector<1x2x256xf32>
    %139 = vector.shape_cast %138 : vector<1x2x256xf32> to vector<2x256xf32>
    %140 = arith.mulf %137, %139 : vector<2x256xf32>
    %141 = arith.addf %121, %140 : vector<2x256xf32>
    %c16_i32 = arith.constant 16 : i32
    %142 = tpu.dynamic_rotate %52 by %c16_i32 dim 1 : vector<2x256xf32>, i32 -> vector<2x256xf32>
    %c17 = arith.constant 17 : index
    %c0_64 = arith.constant 0 : index
    %c0_65 = arith.constant 0 : index
    %143 = vector.load %arg4[%c17, %c0_64, %c0_65] : memref<49x2x256xf32, #tpu.memory_space<vmem>>, vector<1x2x256xf32>
    %144 = vector.shape_cast %143 : vector<1x2x256xf32> to vector<2x256xf32>
    %145 = arith.mulf %142, %144 : vector<2x256xf32>
    %146 = arith.addf %126, %145 : vector<2x256xf32>
    %c15_i32 = arith.constant 15 : i32
    %147 = tpu.dynamic_rotate %52 by %c15_i32 dim 1 : vector<2x256xf32>, i32 -> vector<2x256xf32>
    %c18 = arith.constant 18 : index
    %c0_66 = arith.constant 0 : index
    %c0_67 = arith.constant 0 : index
    %148 = vector.load %arg4[%c18, %c0_66, %c0_67] : memref<49x2x256xf32, #tpu.memory_space<vmem>>, vector<1x2x256xf32>
    %149 = vector.shape_cast %148 : vector<1x2x256xf32> to vector<2x256xf32>
    %150 = arith.mulf %147, %149 : vector<2x256xf32>
    %151 = arith.addf %131, %150 : vector<2x256xf32>
    %c14_i32 = arith.constant 14 : i32
    %152 = tpu.dynamic_rotate %52 by %c14_i32 dim 1 : vector<2x256xf32>, i32 -> vector<2x256xf32>
    %c19 = arith.constant 19 : index
    %c0_68 = arith.constant 0 : index
    %c0_69 = arith.constant 0 : index
    %153 = vector.load %arg4[%c19, %c0_68, %c0_69] : memref<49x2x256xf32, #tpu.memory_space<vmem>>, vector<1x2x256xf32>
    %154 = vector.shape_cast %153 : vector<1x2x256xf32> to vector<2x256xf32>
    %155 = arith.mulf %152, %154 : vector<2x256xf32>
    %156 = arith.addf %136, %155 : vector<2x256xf32>
    %c13_i32 = arith.constant 13 : i32
    %157 = tpu.dynamic_rotate %52 by %c13_i32 dim 1 : vector<2x256xf32>, i32 -> vector<2x256xf32>
    %c20 = arith.constant 20 : index
    %c0_70 = arith.constant 0 : index
    %c0_71 = arith.constant 0 : index
    %158 = vector.load %arg4[%c20, %c0_70, %c0_71] : memref<49x2x256xf32, #tpu.memory_space<vmem>>, vector<1x2x256xf32>
    %159 = vector.shape_cast %158 : vector<1x2x256xf32> to vector<2x256xf32>
    %160 = arith.mulf %157, %159 : vector<2x256xf32>
    %161 = arith.addf %141, %160 : vector<2x256xf32>
    %c3_i32 = arith.constant 3 : i32
    %162 = tpu.dynamic_rotate %52 by %c3_i32 dim 1 : vector<2x256xf32>, i32 -> vector<2x256xf32>
    %c21 = arith.constant 21 : index
    %c0_72 = arith.constant 0 : index
    %c0_73 = arith.constant 0 : index
    %163 = vector.load %arg4[%c21, %c0_72, %c0_73] : memref<49x2x256xf32, #tpu.memory_space<vmem>>, vector<1x2x256xf32>
    %164 = vector.shape_cast %163 : vector<1x2x256xf32> to vector<2x256xf32>
    %165 = arith.mulf %162, %164 : vector<2x256xf32>
    %166 = arith.addf %146, %165 : vector<2x256xf32>
    %c2_i32 = arith.constant 2 : i32
    %167 = tpu.dynamic_rotate %52 by %c2_i32 dim 1 : vector<2x256xf32>, i32 -> vector<2x256xf32>
    %c22 = arith.constant 22 : index
    %c0_74 = arith.constant 0 : index
    %c0_75 = arith.constant 0 : index
    %168 = vector.load %arg4[%c22, %c0_74, %c0_75] : memref<49x2x256xf32, #tpu.memory_space<vmem>>, vector<1x2x256xf32>
    %169 = vector.shape_cast %168 : vector<1x2x256xf32> to vector<2x256xf32>
    %170 = arith.mulf %167, %169 : vector<2x256xf32>
    %171 = arith.addf %151, %170 : vector<2x256xf32>
    %c1_i32 = arith.constant 1 : i32
    %172 = tpu.dynamic_rotate %52 by %c1_i32 dim 1 : vector<2x256xf32>, i32 -> vector<2x256xf32>
    %c23 = arith.constant 23 : index
    %c0_76 = arith.constant 0 : index
    %c0_77 = arith.constant 0 : index
    %173 = vector.load %arg4[%c23, %c0_76, %c0_77] : memref<49x2x256xf32, #tpu.memory_space<vmem>>, vector<1x2x256xf32>
    %174 = vector.shape_cast %173 : vector<1x2x256xf32> to vector<2x256xf32>
    %175 = arith.mulf %172, %174 : vector<2x256xf32>
    %176 = arith.addf %156, %175 : vector<2x256xf32>
    %c24 = arith.constant 24 : index
    %c0_78 = arith.constant 0 : index
    %c0_79 = arith.constant 0 : index
    %177 = vector.load %arg4[%c24, %c0_78, %c0_79] : memref<49x2x256xf32, #tpu.memory_space<vmem>>, vector<1x2x256xf32>
    %178 = vector.shape_cast %177 : vector<1x2x256xf32> to vector<2x256xf32>
    %179 = arith.mulf %52, %178 : vector<2x256xf32>
    %180 = arith.addf %161, %179 : vector<2x256xf32>
    %c255_i32 = arith.constant 255 : i32
    %181 = tpu.dynamic_rotate %52 by %c255_i32 dim 1 : vector<2x256xf32>, i32 -> vector<2x256xf32>
    %c25 = arith.constant 25 : index
    %c0_80 = arith.constant 0 : index
    %c0_81 = arith.constant 0 : index
    %182 = vector.load %arg4[%c25, %c0_80, %c0_81] : memref<49x2x256xf32, #tpu.memory_space<vmem>>, vector<1x2x256xf32>
    %183 = vector.shape_cast %182 : vector<1x2x256xf32> to vector<2x256xf32>
    %184 = arith.mulf %181, %183 : vector<2x256xf32>
    %185 = arith.addf %166, %184 : vector<2x256xf32>
    %c254_i32 = arith.constant 254 : i32
    %186 = tpu.dynamic_rotate %52 by %c254_i32 dim 1 : vector<2x256xf32>, i32 -> vector<2x256xf32>
    %c26 = arith.constant 26 : index
    %c0_82 = arith.constant 0 : index
    %c0_83 = arith.constant 0 : index
    %187 = vector.load %arg4[%c26, %c0_82, %c0_83] : memref<49x2x256xf32, #tpu.memory_space<vmem>>, vector<1x2x256xf32>
    %188 = vector.shape_cast %187 : vector<1x2x256xf32> to vector<2x256xf32>
    %189 = arith.mulf %186, %188 : vector<2x256xf32>
    %190 = arith.addf %171, %189 : vector<2x256xf32>
    %c253_i32 = arith.constant 253 : i32
    %191 = tpu.dynamic_rotate %52 by %c253_i32 dim 1 : vector<2x256xf32>, i32 -> vector<2x256xf32>
    %c27 = arith.constant 27 : index
    %c0_84 = arith.constant 0 : index
    %c0_85 = arith.constant 0 : index
    %192 = vector.load %arg4[%c27, %c0_84, %c0_85] : memref<49x2x256xf32, #tpu.memory_space<vmem>>, vector<1x2x256xf32>
    %193 = vector.shape_cast %192 : vector<1x2x256xf32> to vector<2x256xf32>
    %194 = arith.mulf %191, %193 : vector<2x256xf32>
    %195 = arith.addf %176, %194 : vector<2x256xf32>
    %c243_i32 = arith.constant 243 : i32
    %196 = tpu.dynamic_rotate %52 by %c243_i32 dim 1 : vector<2x256xf32>, i32 -> vector<2x256xf32>
    %c28 = arith.constant 28 : index
    %c0_86 = arith.constant 0 : index
    %c0_87 = arith.constant 0 : index
    %197 = vector.load %arg4[%c28, %c0_86, %c0_87] : memref<49x2x256xf32, #tpu.memory_space<vmem>>, vector<1x2x256xf32>
    %198 = vector.shape_cast %197 : vector<1x2x256xf32> to vector<2x256xf32>
    %199 = arith.mulf %196, %198 : vector<2x256xf32>
    %200 = arith.addf %180, %199 : vector<2x256xf32>
    %c242_i32 = arith.constant 242 : i32
    %201 = tpu.dynamic_rotate %52 by %c242_i32 dim 1 : vector<2x256xf32>, i32 -> vector<2x256xf32>
    %c29 = arith.constant 29 : index
    %c0_88 = arith.constant 0 : index
    %c0_89 = arith.constant 0 : index
    %202 = vector.load %arg4[%c29, %c0_88, %c0_89] : memref<49x2x256xf32, #tpu.memory_space<vmem>>, vector<1x2x256xf32>
    %203 = vector.shape_cast %202 : vector<1x2x256xf32> to vector<2x256xf32>
    %204 = arith.mulf %201, %203 : vector<2x256xf32>
    %205 = arith.addf %185, %204 : vector<2x256xf32>
    %c241_i32 = arith.constant 241 : i32
    %206 = tpu.dynamic_rotate %52 by %c241_i32 dim 1 : vector<2x256xf32>, i32 -> vector<2x256xf32>
    %c30 = arith.constant 30 : index
    %c0_90 = arith.constant 0 : index
    %c0_91 = arith.constant 0 : index
    %207 = vector.load %arg4[%c30, %c0_90, %c0_91] : memref<49x2x256xf32, #tpu.memory_space<vmem>>, vector<1x2x256xf32>
    %208 = vector.shape_cast %207 : vector<1x2x256xf32> to vector<2x256xf32>
    %209 = arith.mulf %206, %208 : vector<2x256xf32>
    %210 = arith.addf %190, %209 : vector<2x256xf32>
    %c240_i32 = arith.constant 240 : i32
    %211 = tpu.dynamic_rotate %52 by %c240_i32 dim 1 : vector<2x256xf32>, i32 -> vector<2x256xf32>
    %c31 = arith.constant 31 : index
    %c0_92 = arith.constant 0 : index
    %c0_93 = arith.constant 0 : index
    %212 = vector.load %arg4[%c31, %c0_92, %c0_93] : memref<49x2x256xf32, #tpu.memory_space<vmem>>, vector<1x2x256xf32>
    %213 = vector.shape_cast %212 : vector<1x2x256xf32> to vector<2x256xf32>
    %214 = arith.mulf %211, %213 : vector<2x256xf32>
    %215 = arith.addf %195, %214 : vector<2x256xf32>
    %c239_i32 = arith.constant 239 : i32
    %216 = tpu.dynamic_rotate %52 by %c239_i32 dim 1 : vector<2x256xf32>, i32 -> vector<2x256xf32>
    %c32 = arith.constant 32 : index
    %c0_94 = arith.constant 0 : index
    %c0_95 = arith.constant 0 : index
    %217 = vector.load %arg4[%c32, %c0_94, %c0_95] : memref<49x2x256xf32, #tpu.memory_space<vmem>>, vector<1x2x256xf32>
    %218 = vector.shape_cast %217 : vector<1x2x256xf32> to vector<2x256xf32>
    %219 = arith.mulf %216, %218 : vector<2x256xf32>
    %220 = arith.addf %200, %219 : vector<2x256xf32>
    %c238_i32 = arith.constant 238 : i32
    %221 = tpu.dynamic_rotate %52 by %c238_i32 dim 1 : vector<2x256xf32>, i32 -> vector<2x256xf32>
    %c33 = arith.constant 33 : index
    %c0_96 = arith.constant 0 : index
    %c0_97 = arith.constant 0 : index
    %222 = vector.load %arg4[%c33, %c0_96, %c0_97] : memref<49x2x256xf32, #tpu.memory_space<vmem>>, vector<1x2x256xf32>
    %223 = vector.shape_cast %222 : vector<1x2x256xf32> to vector<2x256xf32>
    %224 = arith.mulf %221, %223 : vector<2x256xf32>
    %225 = arith.addf %205, %224 : vector<2x256xf32>
    %c237_i32 = arith.constant 237 : i32
    %226 = tpu.dynamic_rotate %52 by %c237_i32 dim 1 : vector<2x256xf32>, i32 -> vector<2x256xf32>
    %c34 = arith.constant 34 : index
    %c0_98 = arith.constant 0 : index
    %c0_99 = arith.constant 0 : index
    %227 = vector.load %arg4[%c34, %c0_98, %c0_99] : memref<49x2x256xf32, #tpu.memory_space<vmem>>, vector<1x2x256xf32>
    %228 = vector.shape_cast %227 : vector<1x2x256xf32> to vector<2x256xf32>
    %229 = arith.mulf %226, %228 : vector<2x256xf32>
    %230 = arith.addf %210, %229 : vector<2x256xf32>
    %c227_i32 = arith.constant 227 : i32
    %231 = tpu.dynamic_rotate %52 by %c227_i32 dim 1 : vector<2x256xf32>, i32 -> vector<2x256xf32>
    %c35 = arith.constant 35 : index
    %c0_100 = arith.constant 0 : index
    %c0_101 = arith.constant 0 : index
    %232 = vector.load %arg4[%c35, %c0_100, %c0_101] : memref<49x2x256xf32, #tpu.memory_space<vmem>>, vector<1x2x256xf32>
    %233 = vector.shape_cast %232 : vector<1x2x256xf32> to vector<2x256xf32>
    %234 = arith.mulf %231, %233 : vector<2x256xf32>
    %235 = arith.addf %215, %234 : vector<2x256xf32>
    %c226_i32 = arith.constant 226 : i32
    %236 = tpu.dynamic_rotate %52 by %c226_i32 dim 1 : vector<2x256xf32>, i32 -> vector<2x256xf32>
    %c36 = arith.constant 36 : index
    %c0_102 = arith.constant 0 : index
    %c0_103 = arith.constant 0 : index
    %237 = vector.load %arg4[%c36, %c0_102, %c0_103] : memref<49x2x256xf32, #tpu.memory_space<vmem>>, vector<1x2x256xf32>
    %238 = vector.shape_cast %237 : vector<1x2x256xf32> to vector<2x256xf32>
    %239 = arith.mulf %236, %238 : vector<2x256xf32>
    %240 = arith.addf %220, %239 : vector<2x256xf32>
    %c225_i32 = arith.constant 225 : i32
    %241 = tpu.dynamic_rotate %52 by %c225_i32 dim 1 : vector<2x256xf32>, i32 -> vector<2x256xf32>
    %c37 = arith.constant 37 : index
    %c0_104 = arith.constant 0 : index
    %c0_105 = arith.constant 0 : index
    %242 = vector.load %arg4[%c37, %c0_104, %c0_105] : memref<49x2x256xf32, #tpu.memory_space<vmem>>, vector<1x2x256xf32>
    %243 = vector.shape_cast %242 : vector<1x2x256xf32> to vector<2x256xf32>
    %244 = arith.mulf %241, %243 : vector<2x256xf32>
    %245 = arith.addf %225, %244 : vector<2x256xf32>
    %c224_i32 = arith.constant 224 : i32
    %246 = tpu.dynamic_rotate %52 by %c224_i32 dim 1 : vector<2x256xf32>, i32 -> vector<2x256xf32>
    %c38 = arith.constant 38 : index
    %c0_106 = arith.constant 0 : index
    %c0_107 = arith.constant 0 : index
    %247 = vector.load %arg4[%c38, %c0_106, %c0_107] : memref<49x2x256xf32, #tpu.memory_space<vmem>>, vector<1x2x256xf32>
    %248 = vector.shape_cast %247 : vector<1x2x256xf32> to vector<2x256xf32>
    %249 = arith.mulf %246, %248 : vector<2x256xf32>
    %250 = arith.addf %230, %249 : vector<2x256xf32>
    %c223_i32 = arith.constant 223 : i32
    %251 = tpu.dynamic_rotate %52 by %c223_i32 dim 1 : vector<2x256xf32>, i32 -> vector<2x256xf32>
    %c39 = arith.constant 39 : index
    %c0_108 = arith.constant 0 : index
    %c0_109 = arith.constant 0 : index
    %252 = vector.load %arg4[%c39, %c0_108, %c0_109] : memref<49x2x256xf32, #tpu.memory_space<vmem>>, vector<1x2x256xf32>
    %253 = vector.shape_cast %252 : vector<1x2x256xf32> to vector<2x256xf32>
    %254 = arith.mulf %251, %253 : vector<2x256xf32>
    %255 = arith.addf %235, %254 : vector<2x256xf32>
    %c222_i32 = arith.constant 222 : i32
    %256 = tpu.dynamic_rotate %52 by %c222_i32 dim 1 : vector<2x256xf32>, i32 -> vector<2x256xf32>
    %c40 = arith.constant 40 : index
    %c0_110 = arith.constant 0 : index
    %c0_111 = arith.constant 0 : index
    %257 = vector.load %arg4[%c40, %c0_110, %c0_111] : memref<49x2x256xf32, #tpu.memory_space<vmem>>, vector<1x2x256xf32>
    %258 = vector.shape_cast %257 : vector<1x2x256xf32> to vector<2x256xf32>
    %259 = arith.mulf %256, %258 : vector<2x256xf32>
    %260 = arith.addf %240, %259 : vector<2x256xf32>
    %c221_i32 = arith.constant 221 : i32
    %261 = tpu.dynamic_rotate %52 by %c221_i32 dim 1 : vector<2x256xf32>, i32 -> vector<2x256xf32>
    %c41 = arith.constant 41 : index
    %c0_112 = arith.constant 0 : index
    %c0_113 = arith.constant 0 : index
    %262 = vector.load %arg4[%c41, %c0_112, %c0_113] : memref<49x2x256xf32, #tpu.memory_space<vmem>>, vector<1x2x256xf32>
    %263 = vector.shape_cast %262 : vector<1x2x256xf32> to vector<2x256xf32>
    %264 = arith.mulf %261, %263 : vector<2x256xf32>
    %265 = arith.addf %245, %264 : vector<2x256xf32>
    %c211_i32 = arith.constant 211 : i32
    %266 = tpu.dynamic_rotate %52 by %c211_i32 dim 1 : vector<2x256xf32>, i32 -> vector<2x256xf32>
    %c42 = arith.constant 42 : index
    %c0_114 = arith.constant 0 : index
    %c0_115 = arith.constant 0 : index
    %267 = vector.load %arg4[%c42, %c0_114, %c0_115] : memref<49x2x256xf32, #tpu.memory_space<vmem>>, vector<1x2x256xf32>
    %268 = vector.shape_cast %267 : vector<1x2x256xf32> to vector<2x256xf32>
    %269 = arith.mulf %266, %268 : vector<2x256xf32>
    %270 = arith.addf %250, %269 : vector<2x256xf32>
    %c210_i32 = arith.constant 210 : i32
    %271 = tpu.dynamic_rotate %52 by %c210_i32 dim 1 : vector<2x256xf32>, i32 -> vector<2x256xf32>
    %c43 = arith.constant 43 : index
    %c0_116 = arith.constant 0 : index
    %c0_117 = arith.constant 0 : index
    %272 = vector.load %arg4[%c43, %c0_116, %c0_117] : memref<49x2x256xf32, #tpu.memory_space<vmem>>, vector<1x2x256xf32>
    %273 = vector.shape_cast %272 : vector<1x2x256xf32> to vector<2x256xf32>
    %274 = arith.mulf %271, %273 : vector<2x256xf32>
    %275 = arith.addf %255, %274 : vector<2x256xf32>
    %c209_i32 = arith.constant 209 : i32
    %276 = tpu.dynamic_rotate %52 by %c209_i32 dim 1 : vector<2x256xf32>, i32 -> vector<2x256xf32>
    %c44 = arith.constant 44 : index
    %c0_118 = arith.constant 0 : index
    %c0_119 = arith.constant 0 : index
    %277 = vector.load %arg4[%c44, %c0_118, %c0_119] : memref<49x2x256xf32, #tpu.memory_space<vmem>>, vector<1x2x256xf32>
    %278 = vector.shape_cast %277 : vector<1x2x256xf32> to vector<2x256xf32>
    %279 = arith.mulf %276, %278 : vector<2x256xf32>
    %280 = arith.addf %260, %279 : vector<2x256xf32>
    %c208_i32 = arith.constant 208 : i32
    %281 = tpu.dynamic_rotate %52 by %c208_i32 dim 1 : vector<2x256xf32>, i32 -> vector<2x256xf32>
    %c45 = arith.constant 45 : index
    %c0_120 = arith.constant 0 : index
    %c0_121 = arith.constant 0 : index
    %282 = vector.load %arg4[%c45, %c0_120, %c0_121] : memref<49x2x256xf32, #tpu.memory_space<vmem>>, vector<1x2x256xf32>
    %283 = vector.shape_cast %282 : vector<1x2x256xf32> to vector<2x256xf32>
    %284 = arith.mulf %281, %283 : vector<2x256xf32>
    %285 = arith.addf %265, %284 : vector<2x256xf32>
    %c207_i32 = arith.constant 207 : i32
    %286 = tpu.dynamic_rotate %52 by %c207_i32 dim 1 : vector<2x256xf32>, i32 -> vector<2x256xf32>
    %c46 = arith.constant 46 : index
    %c0_122 = arith.constant 0 : index
    %c0_123 = arith.constant 0 : index
    %287 = vector.load %arg4[%c46, %c0_122, %c0_123] : memref<49x2x256xf32, #tpu.memory_space<vmem>>, vector<1x2x256xf32>
    %288 = vector.shape_cast %287 : vector<1x2x256xf32> to vector<2x256xf32>
    %289 = arith.mulf %286, %288 : vector<2x256xf32>
    %290 = arith.addf %270, %289 : vector<2x256xf32>
    %c206_i32 = arith.constant 206 : i32
    %291 = tpu.dynamic_rotate %52 by %c206_i32 dim 1 : vector<2x256xf32>, i32 -> vector<2x256xf32>
    %c47 = arith.constant 47 : index
    %c0_124 = arith.constant 0 : index
    %c0_125 = arith.constant 0 : index
    %292 = vector.load %arg4[%c47, %c0_124, %c0_125] : memref<49x2x256xf32, #tpu.memory_space<vmem>>, vector<1x2x256xf32>
    %293 = vector.shape_cast %292 : vector<1x2x256xf32> to vector<2x256xf32>
    %294 = arith.mulf %291, %293 : vector<2x256xf32>
    %295 = arith.addf %275, %294 : vector<2x256xf32>
    %c205_i32 = arith.constant 205 : i32
    %296 = tpu.dynamic_rotate %52 by %c205_i32 dim 1 : vector<2x256xf32>, i32 -> vector<2x256xf32>
    %c48 = arith.constant 48 : index
    %c0_126 = arith.constant 0 : index
    %c0_127 = arith.constant 0 : index
    %297 = vector.load %arg4[%c48, %c0_126, %c0_127] : memref<49x2x256xf32, #tpu.memory_space<vmem>>, vector<1x2x256xf32>
    %298 = vector.shape_cast %297 : vector<1x2x256xf32> to vector<2x256xf32>
    %299 = arith.mulf %296, %298 : vector<2x256xf32>
    %300 = arith.addf %280, %299 : vector<2x256xf32>
    %301 = arith.addf %300, %285 : vector<2x256xf32>
    %302 = arith.addf %290, %295 : vector<2x256xf32>
    %303 = arith.addf %301, %302 : vector<2x256xf32>
    %cst_128 = arith.constant dense<0.000000e+00> : vector<256xf32>
    %304 = vector.multi_reduction <add>, %303, %cst_128 [0] : vector<2x256xf32> to vector<256xf32>
    %305 = vector.shape_cast %304 : vector<256xf32> to vector<1x256xf32>
    %c0_129 = arith.constant 0 : index
    %306 = memref.load %arg5[%c0_129] : memref<1xf32, #tpu.memory_space<smem>>
    %307 = vector.broadcast %306 : f32 to vector<1x256xf32>
    %308 = arith.addf %305, %307 : vector<1x256xf32>
    %309 = arith.negf %308 : vector<1x256xf32>
    %310 = math.exp %309 : vector<1x256xf32>
    %cst_130 = arith.constant 1.000000e+00 : f32
    %311 = vector.broadcast %cst_130 : f32 to vector<1x256xf32>
    %312 = arith.addf %311, %310 : vector<1x256xf32>
    %313 = arith.divf %311, %312 : vector<1x256xf32>
    %314 = vector.broadcast %313 : vector<1x256xf32> to vector<32x256xf32>
    %315 = arith.mulf %45, %314 : vector<32x256xf32>
    %c0_131 = arith.constant 0 : index
    %c0_132 = arith.constant 0 : index
    %c0_133 = arith.constant 0 : index
    %316 = vector.load %arg6[%c0_131, %c0_132, %c0_133] : memref<1x32x256xf32, #tpu.memory_space<vmem>>, vector<1x32x256xf32>
    %317 = vector.shape_cast %316 : vector<1x32x256xf32> to vector<32x256xf32>
    %318 = vector.shape_cast %315 : vector<32x256xf32> to vector<1x32x256xf32>
    tpu.vector_store %arg6[%c0_131, %c0_132, %c0_133], %318 {strides = array<i32>} : memref<1x32x256xf32, #tpu.memory_space<vmem>>, vector<1x32x256xf32>,
    return
  }
  func.func @transform_0(%arg0: i32) -> (i32, i32, i32) {
    %c0_i32 = arith.constant 0 : i32
    %c0_i32_0 = arith.constant 0 : i32
    %c0_i32_1 = arith.constant 0 : i32
    return %arg0, %c0_i32, %c0_i32_0 : i32, i32, i32
  }
  func.func @transform_1(%arg0: i32) -> (i32, i32) {
    %c0_i32 = arith.constant 0 : i32
    %c0_i32_0 = arith.constant 0 : i32
    %c0_i32_1 = arith.constant 0 : i32
    return %c0_i32, %c0_i32_0 : i32, i32
  }
  func.func @transform_2(%arg0: i32) -> (i32, i32) {
    %c0_i32 = arith.constant 0 : i32
    %c0_i32_0 = arith.constant 0 : i32
    %c0_i32_1 = arith.constant 0 : i32
    return %c0_i32, %c0_i32_0 : i32, i32
  }
  func.func @transform_3(%arg0: i32) -> (i32, i32, i32) {
    %c0_i32 = arith.constant 0 : i32
    %c0_i32_0 = arith.constant 0 : i32
    %c0_i32_1 = arith.constant 0 : i32
    %c0_i32_2 = arith.constant 0 : i32
    return %c0_i32, %c0_i32_0, %c0_i32_1 : i32, i32, i32
  }
  func.func @transform_4(%arg0: i32) -> i32 {
    %c0_i32 = arith.constant 0 : i32
    %c0_i32_0 = arith.constant 0 : i32
    return %c0_i32 : i32
  }
  func.func @transform_5(%arg0: i32) -> (i32, i32, i32) {
    %c0_i32 = arith.constant 0 : i32
    %c0_i32_0 = arith.constant 0 : i32
    %c0_i32_1 = arith.constant 0 : i32
    return %arg0, %c0_i32, %c0_i32_0 : i32, i32, i32
  }
}

</mosaic_0001>

<bundles_post_ra>
// kernel: mul.18
= control target key start
LH: loop header
LB: loop body
LE: loop exit
PB: predicated region body
PF: predicated region fallthrough
CT: control target
= control target key end

     0   :  { %s7_s6 = smov 3  ;;  %s21_s9 = smov 3  ;;  %vm4_vm0 = vcmask 56320   ;;  %vm11_vm1 = vcmask 400720   ;;  %vm18_vm2 = vcmask 343320   ;;  %vm25_vm3 = vcmask 285920   ;;  %s106_s0 = inlined_call_operand.vmem [shape: f32[7,7,2], index: 0, kind: input, shape index: {}]   ;;  %s107_s1 = inlined_call_operand.vmem [shape: f32[49,2], index: 1, kind: output, shape index: {}]  }
   0x1   :  { %v54_v0 = vld [vmem:[%s106_s0 + $0x6] ss:$8 sm:%s7_s6]   ;;  %s66_s10 = smov 42   ;;  %v56_v1 = vld [vmem:[%s106_s0 + $0x4] ss:$8 sm:%s21_s9]   ;;  %s14_s13 = smov 3 }
   0x2   :  { %9 = vrot.lane.b32.xlu0 %v54_v0, %s66_s10  ;;  %s67_s14 = smov 28   ;;  %v55_v2 = vld [vmem:[%s106_s0 + $0x5] ss:$8 sm:%s14_s13]   ;;  %s28_s17 = smov 3  ;;  %vm32_vm4 = vcmask 228520   ;;  %vm39_vm5 = vcmask 171120  }
   0x3   :  { %23 = vrot.lane.b32.xlu1 %v56_v1, %s67_s14  ;;  %v57_v3 = vld [vmem:[%s106_s0 + $0x3] ss:$8 sm:%s28_s17]   ;;  %s35_s20 = smov 3  ;;  %s42_s21 = smov 3  ;;  %vm46_vm6 = vcmask 113720  }
   0x4   :  { %s68_s22 = smov 35   ;;  %v58_v4 = vld [vmem:[%s106_s0 + $0x2] ss:$8 sm:%s35_s20]   ;;  %s2_s25 = smov 3  ;;  %v59_v6 = vld [vmem:[%s106_s0 + $0x1] ss:$8 sm:%s42_s21]  }
   0x5   :  { %s69_s26 = smov 21   ;;  %v3_v5 = vld [vmem:[%s106_s0] ss:$8 sm:%s2_s25]   ;;  %s70_s0 = smov 14  }
   0x6   :  { %16 = vrot.lane.b32.xlu0 %v55_v2, %s68_s22  ;;  %5 = vst.msk [vmem:[#allocation0] sm:$0x3] %vm4_vm0, %v3_v5   ;;  %s71_s2 = smov 7  }
   0x7   :  { %30 = vrot.lane.b32.xlu1 %v57_v3, %s69_s26 }
   0xa   :  { %37 = vrot.lane.b32.xlu0 %v58_v4, %s70_s0 }
   0xb   :  { %44 = vrot.lane.b32.xlu1 %v59_v6, %s71_s2 }
  0x74   :  { %v10_v7 = vpop.permute.xlu0 %9  }
  0x75   :  { %12 = vst.msk [vmem:[#allocation0] sm:$0x3] %vm11_vm1, %v10_v7   ;;  %v24_v8 = vpop.permute.xlu1 %23  }
  0x78   :  { %v17_v9 = vpop.permute.xlu0 %16  }
  0x79   :  { %19 = vst.msk [vmem:[#allocation0] sm:$0x3] %vm18_vm2, %v17_v9   ;;  %v31_v10 = vpop.permute.xlu1 %30  }
  0x7a   :  { %26 = vst.msk [vmem:[#allocation0] sm:$0x3] %vm25_vm3, %v24_v8  }
  0x7b   :  { %33 = vst.msk [vmem:[#allocation0] sm:$0x3] %vm32_vm4, %v31_v10  }
  0x7c   :  { %v38_v11 = vpop.permute.xlu0 %37  }
  0x7d   :  { %40 = vst.msk [vmem:[#allocation0] sm:$0x3] %vm39_vm5, %v38_v11   ;;  %v45_v12 = vpop.permute.xlu1 %44  }
  0x7e   :  { %47 = vst.msk [vmem:[#allocation0] sm:$0x3] %vm46_vm6, %v45_v12  }
  0x85   :  { %v51_v13 = vld [vmem:[#allocation0] sm:$0x3] }
  0x86   :  { %53 = vst [vmem:[%s107_s1] sm:$0x3] %v51_v13 }

// kernel: attn_conv.1
= control target key start
LH: loop header
LB: loop body
LE: loop exit
PB: predicated region body
PF: predicated region fallthrough
CT: control target
= control target key end

     0   :  { %s2897_s20 = smov 0   ;;  %s4031_s0 = inlined_call_operand.vmem [shape: f32[2,37,256], index: 0, kind: input, shape index: {}]   ;;  %s4032_s1 = inlined_call_operand.vmem [shape: f32[32,37], index: 1, kind: input, shape index: {}]   ;;  %s4033_s2 = inlined_call_operand.vmem [shape: f32[32,8], index: 2, kind: input, shape index: {}]   ;;  %s4034_s3 = inlined_call_operand.vmem [shape: f32[49,2,256], index: 3, kind: input, shape index: {}]   ;;  %s4035_s4 = inlined_call_operand.<no memory space> [shape: f32[1], index: 4, kind: input, shape index: {}]   ;;  %s4036_s5 = inlined_call_operand.vmem [shape: f32[2,32,256], index: 5, kind: output, shape index: {}]  }
   0x1   :  { %10 = sst [smem:[#allocation2]] %s4035_s4 }
   0x2 LB: > { %s2517_s21 = sadd.s32 4294967295, %s2811_s20   ;;  %p2521_p0 = scmp.ge.s32.totalorder %s2811_s20, 1  ;;  %s2811_s20 = sphi %s2897_s20, %s16_s20  }
   0x3   : > { %p188_p1 = scmp.lt.s32.totalorder %s2811_s20, 3 }
   0x5   : > { %p189_p2 = pnand %p2521_p0, %p188_p1 }
   0x7   : > { %192 = sbr.rel (%p189_p2) target bundleno = 1410 (0x582), region = 40 }
   0xe   : > { %p216_p3 = scmp.lt.s32.totalorder %s2517_s21, 1  ;;  %v226_v0 = vld [vmem:[%s4032_s1] sm:$0xff]  ;;  %vm240_vm0 = vcmask 302080   ;;  %v227_v1 = vld [vmem:[%s4032_s1 + $0x8] sm:$0xff]  ;;  %v2813_v2 = vmov 0.0   ;;  %v228_v5 = vld [vmem:[%s4032_s1 + $0x10] sm:$0xff] }
   0xf   : > { %334 = vmatprep.mubr.f32.mxu1 %v2813_v2  ;;  %713 = vmatprep.mubr.f32.mxu0 %v2813_v2  ;;  %v242_v3 = vsel %vm240_vm0, %v226_v0, 0  ;;  %v245_v4 = vsel %vm240_vm0, %v227_v1, 0  ;;  %v229_v6 = vld [vmem:[%s4032_s1 + $0x18] sm:$0xff]  ;;  %v248_v9 = vsel %vm240_vm0, %v228_v5, 0  ;;  %vm253_vm1 = vcmask 1044480   ;;  %s2814_s10 = smov 123  }
  0x10   : > { %s4069_s21 = smov (!%p216_p3, %s2517_s21), 1  ;;  %v2921_v7 = vand.u32 4294901760, %v242_v3  ;;  %v2923_v8 = vand.u32 4294901760, %v245_v4  ;;  %v251_v10 = vsel %vm240_vm0, %v229_v6, 0  ;;  %v2925_v11 = vand.u32 4294901760, %v248_v9  ;;  %s2815_s19 = smov 2  }
  0x11   : > { %s2719_s29 = smul.u32 80, %s4069_s21  ;;  %v2934_v14 = vand.u32 4294901760, %v251_v10  ;;  %vm1014_vm2 = vcmask 15360   ;;  %s2816_s22 = smov 126   ;;  %vm1236_vm3 = vcmask 1040384  }
  0x12   : > { %v2929_v12 = vsub.f32 %v242_v3, %v2921_v7  ;;  %v2932_v13 = vsub.f32 %v245_v4, %v2923_v8  ;;  %v2937_v15 = vsub.f32 %v248_v9, %v2925_v11  ;;  %s2818_s23 = smov 48   ;;  %s2819_s4 = smov 51  }
  0x13   : > { %s220_s7 = scalar_lea.vmem %s4031_s0, %s2719_s29  ;;  %v2946_v28 = vsub.f32 %v251_v10, %v2934_v14  ;;  %s2820_s24 = smov 47  }
  0x14   : > { %v337_v16 = vand.u32 4294901760, %v2929_v12  ;;  %v231_v17 = vld [vmem:[%s220_s7 + $0x8] sm:$0xff]  ;;  %v233_v18 = vld [vmem:[%s220_s7 + $0x18] sm:$0xff]  ;;  %v230_v19 = vld [vmem:[%s220_s7] sm:$0xff]  ;;  %v348_v20 = vand.u32 4294901760, %v2932_v13  ;;  %v359_v21 = vand.u32 4294901760, %v2937_v15 }
  0x15   : > { %v260_v22 = vand.u32 4294901760, %v231_v17  ;;  %v264_v23 = vand.u32 4294901760, %v233_v18  ;;  %v232_v24 = vld [vmem:[%s220_s7 + $0x10] sm:$0xff]  ;;  %v262_v25 = vand.u32 4294901760, %v230_v19  ;;  %v235_v26 = vld [vmem:[%s220_s7 + $0x28] sm:$0xff]  ;;  %v237_v27 = vld [vmem:[%s220_s7 + $0x38] sm:$0xff] }
  0x16   : > { %v266_v29 = vand.u32 4294901760, %v232_v24  ;;  %v268_v30 = vand.u32 4294901760, %v235_v26  ;;  %v272_v31 = vand.u32 4294901760, %v237_v27  ;;  %v234_v32 = vld [vmem:[%s220_s7 + $0x20] sm:$0xff]  ;;  %v236_v33 = vld [vmem:[%s220_s7 + $0x30] sm:$0xff]  ;;  %v2951_v34 = vsub.f32 %v2929_v12, %v337_v16  ;;  %s2821_s25 = smov 46  }
  0x17   : > { %v2953_v35 = vpack.c.bf16 %v264_v23, %v260_v22  ;;  %v2955_v36 = vsub.f32 %v231_v17, %v260_v22  ;;  %v2957_v37 = vsub.f32 %v233_v18, %v264_v23  ;;  %v2959_v38 = vsub.f32 %v230_v19, %v262_v25  ;;  %v239_v39 = vld [vmem:[%s220_s7 + $0x48] sm:$0x1f]  ;;  %v238_v40 = vld [vmem:[%s220_s7 + $0x40] sm:$0x1f]  ;;  %s2822_s26 = smov 50   ;;  %s2823_s27 = smov 45  }
  0x18   : > { %v2961_v41 = vpack.c.bf16 %v266_v29, %v262_v25  ;;  %v2963_v42 = vsub.f32 %v232_v24, %v266_v29  ;;  %v2965_v43 = vpack.c.bf16 %v272_v31, %v268_v30  ;;  %v2967_v44 = vsub.f32 %v235_v26, %v268_v30  ;;  %s2824_s28 = smov 35   ;;  %s2825_s29 = smov 49  }
  0x19   : > { %2632 = vmatprep.subr.bf16.mxu1 %v2953_v35  ;;  %2656 = vmatprep.subr.bf16.mxu0 %v2953_v35  ;;  %v2971_v45 = vsub.f32 %v237_v27, %v272_v31  ;;  %v270_v46 = vand.u32 4294901760, %v234_v32  ;;  %v274_v47 = vand.u32 4294901760, %v236_v33  ;;  %v258_v48 = vsel %vm253_vm1, %v239_v39, 0  ;;  %s2826_s30 = smov 34   ;;  %s2827_s6 = smov 33  }
  0x1a   : > { %2634 = vmatpush1.bf16.msra.mxu1 %v2961_v41  ;;  %2658 = vmatpush1.bf16.msra.mxu0 %v2961_v41  ;;  %v255_v49 = vsel %vm253_vm1, %v238_v40, 0  ;;  %v381_v50 = vand.u32 4294901760, %v2955_v36  ;;  %v349_v51 = vsub.f32 %v2932_v13, %v348_v20  ;;  %v370_v52 = vand.u32 4294901760, %v2946_v28  ;;  %s2828_s7 = smov 32   ;;  %s2829_s8 = smov 31  }
  0x1b   : > { %2636 = vmatprep.subr.bf16.mxu1 %v2965_v43  ;;  %2660 = vmatprep.subr.bf16.mxu0 %v2965_v43  ;;  %v2984_v53 = vpack.c.bf16 %v274_v47, %v270_v46  ;;  %v2986_v54 = vsub.f32 %v234_v32, %v270_v46  ;;  %v2988_v55 = vand.u32 4294901760, %v258_v48  ;;  %v2990_v56 = vand.u32 4294901760, %v255_v49  ;;  %s2830_s9 = smov 30   ;;  %s2832_s11 = smov 19  }
  0x1c   : > { %v382_v57 = vsub.f32 %v2955_v36, %v381_v50  ;;  %v393_v58 = vand.u32 4294901760, %v2957_v37  ;;  %v387_v59 = vand.u32 4294901760, %v2959_v38  ;;  %v399_v60 = vand.u32 4294901760, %v2963_v42  ;;  %s2833_s12 = smov 18   ;;  %s2834_s13 = smov 17  }
  0x1d   : > { %v2996_v61 = vsub.f32 %v236_v33, %v274_v47  ;;  %v339_v62 = vand.u32 4294901760, %v2951_v34  ;;  %v405_v63 = vand.u32 4294901760, %v2967_v44  ;;  %v417_v0 = vand.u32 4294901760, %v2971_v45  ;;  %s2835_s14 = smov 16   ;;  %s2836_s15 = smov 15  }
  0x1e   : > { %2638 = vmatpush1.bf16.msra.mxu1 %v2984_v53  ;;  %2662 = vmatpush1.bf16.msra.mxu0 %v2984_v53  ;;  %v3004_v1 = vsub.f32 %v255_v49, %v2990_v56  ;;  %v383_v3 = vand.u32 4294901760, %v382_v57  ;;  %v394_v4 = vsub.f32 %v2957_v37, %v393_v58  ;;  %v388_v5 = vsub.f32 %v2959_v38, %v387_v59  ;;  %s2837_s16 = smov 14   ;;  %s2838_s17 = smov 13  }
  0x1f   : > { %277 = vmatprep.subr.mxu1 %v2988_v55  ;;  %656 = vmatprep.subr.mxu0 %v2988_v55  ;;  %v2663_v6 = vpack.c.bf16 %v393_v58, %v381_v50  ;;  %v400_v9 = vsub.f32 %v2963_v42, %v399_v60  ;;  %v406_v10 = vsub.f32 %v2967_v44, %v405_v63  ;;  %v411_v17 = vand.u32 4294901760, %v2986_v54  ;;  %s2839_s18 = smov 3  }
  0x20   : > { %v395_v18 = vand.u32 4294901760, %v394_v4  ;;  %v389_v19 = vand.u32 4294901760, %v388_v5  ;;  %v2665_v22 = vpack.c.bf16 %v399_v60, %v387_v59  ;;  %v418_v23 = vsub.f32 %v2971_v45, %v417_v0 }
  0x21   : > { %v401_v24 = vand.u32 4294901760, %v400_v9  ;;  %v407_v25 = vand.u32 4294901760, %v406_v10  ;;  %v412_v26 = vsub.f32 %v2986_v54, %v411_v17  ;;  %v423_v27 = vand.u32 4294901760, %v2996_v61 }
  0x22   : > { %279 = vmatpush1.msra.mxu1 %v2990_v56  ;;  %658 = vmatpush1.msra.mxu0 %v2990_v56  ;;  %v2639_v29 = vpack.c.bf16 %v395_v18, %v383_v3  ;;  %v350_v30 = vand.u32 4294901760, %v349_v51  ;;  %v419_v31 = vand.u32 4294901760, %v418_v23  ;;  %v3019_v32 = vsub.f32 %v258_v48, %v2988_v55 }
  0x23   : > { %340 = vmatmul.mubr.f32.vlgmr.msra.gmra.mrb[0].mxu1 %v339_v62  ;;  %717 = vmatmul.mubr.f32.vlgmr.msra.gmra.mrb[0].mxu0 %v337_v16  ;;  %v2641_v33 = vpack.c.bf16 %v401_v24, %v389_v19  ;;  %v413_v34 = vand.u32 4294901760, %v412_v26  ;;  %v424_v39 = vsub.f32 %v2996_v61, %v423_v27  ;;  %v360_v40 = vsub.f32 %v2937_v15, %v359_v21  ;;  %v3132_v26 = vld [vmem:[%s4033_s2 + $0x8] sm:$0xff] }
  0x24   : > { %2640 = vmatprep.subr.bf16.mxu1 %v2639_v29  ;;  %2664 = vmatprep.subr.bf16.mxu0 %v2663_v6  ;;  %v2643_v46 = vpack.c.bf16 %v419_v31, %v407_v25  ;;  %v2667_v47 = vpack.c.bf16 %v417_v0, %v405_v63  ;;  %v429_v49 = vand.u32 4294901760, %v3019_v32  ;;  %v435_v50 = vand.u32 4294901760, %v3004_v1 }
  0x25   : > { %2642 = vmatpush1.bf16.msra.mxu1 %v2641_v33  ;;  %2666 = vmatpush1.bf16.msra.mxu0 %v2665_v22  ;;  %v425_v48 = vand.u32 4294901760, %v424_v39  ;;  %v2669_v16 = vpack.c.bf16 %v423_v27, %v411_v17  ;;  %v361_v58 = vand.u32 4294901760, %v360_v40  ;;  %v371_v59 = vsub.f32 %v2946_v28, %v370_v52  ;;  %v980_v22 = vld [vmem:[%s4033_s2] sm:$0x1] }
  0x26   : > { %345 = vmatprep.mubr.f32.mxu1 %v2813_v2  ;;  %722 = vmatprep.mubr.f32.mxu0 %v2813_v2  ;;  %v430_v51 = vsub.f32 %v3019_v32, %v429_v49  ;;  %v436_v60 = vsub.f32 %v3004_v1, %v435_v50  ;;  %v2647_v0 = vpack.c.bf16 %v2957_v37, %v2955_v36 }
  0x27   : > { %351 = vmatmul.mubr.f32.gmra.mrb[2].mxu1 %v350_v30  ;;  %726 = vmatmul.mubr.f32.gmra.mrb[2].mxu0 %v348_v20  ;;  %v2645_v57 = vpack.c.bf16 %v425_v48, %v413_v34  ;;  %v372_v20 = vand.u32 4294901760, %v371_v59  ;;  %v2651_v3 = vpack.c.bf16 %v2971_v45, %v2967_v44  ;;  %v2653_v36 = vpack.c.bf16 %v2996_v61, %v2986_v54  ;;  %v3137_v30 = vld [vmem:[%s4033_s2] sm:$0xff]  ;;  %v3144_v34 = vld [vmem:[%s4033_s2 + $0x10] sm:$0xff] }
  0x28   : > { %2644 = vmatprep.subr.bf16.mxu1 %v2643_v46  ;;  %2668 = vmatprep.subr.bf16.mxu0 %v2667_v47  ;;  %v431_v62 = vand.u32 4294901760, %v430_v51  ;;  %v437_v63 = vand.u32 4294901760, %v436_v60  ;;  %v3154_v51 = vld [vmem:[%s4033_s2 + $0x18] sm:$0xff] }
  0x29   : > { %356 = vmatprep.mubr.f32.mxu1 %v2813_v2  ;;  %2646 = vmatpush1.bf16.msra.mxu1 %v2645_v57 }
  0x2a   : > { %731 = vmatprep.mubr.f32.mxu0 %v2813_v2  ;;  %2670 = vmatpush1.bf16.msra.mxu0 %v2669_v16 }
  0x2b   : > { %362 = vmatmul.mubr.f32.gmra.mrb[4].mxu1 %v361_v58  ;;  %735 = vmatmul.mubr.f32.gmra.mrb[4].mxu0 %v359_v21  ;;  %v2649_v21 = vpack.c.bf16 %v2963_v42, %v2959_v38 }
  0x2c   : > { %367 = vmatprep.mubr.f32.mxu1 %v2813_v2  ;;  %432 = vmatprep.subr.mxu1 %v431_v62 }
  0x2d   : > { %740 = vmatprep.mubr.f32.mxu0 %v2813_v2  ;;  %785 = vmatprep.subr.mxu0 %v429_v49 }
  0x2e   : > { %438 = vmatpush1.msra.mxu1 %v437_v63  ;;  %789 = vmatpush1.msra.mxu0 %v435_v50 }
  0x2f   : > { %373 = vmatmul.mubr.f32.gmra.mrb[6].mxu1 %v372_v20  ;;  %744 = vmatmul.mubr.f32.gmra.mrb[6].mxu0 %v370_v52 }
  0x30   : > { %493 = vmatprep.mubr.f32.mxu1 %v2813_v2  ;;  %844 = vmatprep.mubr.f32.mxu0 %v2813_v2 }
  0x31   : > { %2648 = vmatprep.subr.bf16.mxu1 %v2647_v0  ;;  %2672 = vmatprep.subr.bf16.mxu0 %v2953_v35 }
  0x33   : > { %495 = vmatmul.mubr.f32.vlgmr.msra.gmra.mrb[0].mxu1 %v2921_v7  ;;  %846 = vmatmul.mubr.f32.vlgmr.msra.gmra.mrb[0].mxu0 %v2921_v7 }
  0x34   : > { %2650 = vmatpush1.bf16.msra.mxu1 %v2649_v21  ;;  %2674 = vmatpush1.bf16.msra.mxu0 %v2961_v41 }
  0x35   : > { %500 = vmatprep.mubr.f32.mxu1 %v2813_v2  ;;  %851 = vmatprep.mubr.f32.mxu0 %v2813_v2 }
  0x36   : > { %2652 = vmatprep.subr.bf16.mxu1 %v2651_v3  ;;  %2676 = vmatprep.subr.bf16.mxu0 %v2965_v43 }
  0x37   : > { %502 = vmatmul.mubr.f32.gmra.mrb[2].mxu1 %v2923_v8  ;;  %853 = vmatmul.mubr.f32.gmra.mrb[2].mxu0 %v2923_v8 }
  0x38   : > { %507 = vmatprep.mubr.f32.mxu1 %v2813_v2  ;;  %2654 = vmatpush1.bf16.msra.mxu1 %v2653_v36 }
  0x39   : > { %858 = vmatprep.mubr.f32.mxu0 %v2813_v2  ;;  %2678 = vmatpush1.bf16.msra.mxu0 %v2984_v53 }
  0x3a   : > { %548 = vmatprep.subr.mxu1 %v3019_v32  ;;  %890 = vmatprep.subr.mxu0 %v2988_v55 }
  0x3b   : > { %509 = vmatmul.mubr.f32.gmra.mrb[4].mxu1 %v2925_v11  ;;  %860 = vmatmul.mubr.f32.gmra.mrb[4].mxu0 %v2925_v11 }
  0x3c   : > { %514 = vmatprep.mubr.f32.mxu1 %v2813_v2  ;;  %865 = vmatprep.mubr.f32.mxu0 %v2813_v2 }
  0x3d   : > { %551 = vmatpush1.msra.mxu1 %v3004_v1  ;;  %892 = vmatpush1.msra.mxu0 %v2990_v56 }
  0x3f   : > { %516 = vmatmul.mubr.f32.gmra.mrb[6].mxu1 %v2934_v14  ;;  %867 = vmatmul.mubr.f32.gmra.mrb[6].mxu0 %v2934_v14 }
  0x40   : > { %606 = vmatprep.mubr.f32.mxu1 %v2813_v2  ;;  %947 = vmatprep.mubr.f32.mxu0 %v2813_v2 }
  0x43   : > { %609 = vmatmul.mubr.f32.vlgmr.msra.gmra.mrb[0].mxu1 %v2929_v12  ;;  %949 = vmatmul.mubr.f32.vlgmr.msra.gmra.mrb[0].mxu0 %v2921_v7 }
  0x44   : > { %614 = vmatprep.mubr.f32.mxu1 %v2813_v2  ;;  %954 = vmatprep.mubr.f32.mxu0 %v2813_v2 }
  0x47   : > { %617 = vmatmul.mubr.f32.gmra.mrb[2].mxu1 %v2932_v13  ;;  %956 = vmatmul.mubr.f32.gmra.mrb[2].mxu0 %v2923_v8 }
  0x48   : > { %622 = vmatprep.mubr.f32.mxu1 %v2813_v2  ;;  %961 = vmatprep.mubr.f32.mxu0 %v2813_v2 }
  0x4b   : > { %625 = vmatmul.mubr.f32.gmra.mrb[4].mxu1 %v2937_v15  ;;  %963 = vmatmul.mubr.f32.gmra.mrb[4].mxu0 %v2925_v11 }
  0x4c   : > { %630 = vmatprep.mubr.f32.mxu1 %v2813_v2  ;;  %968 = vmatprep.mubr.f32.mxu0 %v2813_v2 }
  0x4f   : > { %633 = vmatmul.mubr.f32.gmra.mrb[6].mxu1 %v2946_v28  ;;  %970 = vmatmul.mubr.f32.gmra.mrb[6].mxu0 %v2934_v14 }
 0x116   : > { %v610_v7 = vpop.f32.mrb[0].mxu1  ;;  %v950_v12 = vpop.f32.mrb[0].mxu0 }
 0x117   : > { %v3094_v13 = vadd.f32 %v950_v12, %v610_v7  ;;  %v612_v8 = vpop.f32.mrb[1].mxu1  ;;  %v952_v35 = vpop.f32.mrb[1].mxu0 }
 0x118   : > { %v3096_v37 = vadd.f32 %v952_v35, %v612_v8 }
 0x11a   : > { %v618_v38 = vpop.f32.mrb[2].mxu1  ;;  %v957_v15 = vpop.f32.mrb[2].mxu0  ;;  %v998_v11 = vmax.f32 %v3094_v13, %v3096_v37  ;;  %v981_v2 = vadd.f32 %v3096_v37, %v3094_v13 }
 0x11b   : > { %v3102_v41 = vadd.f32 %v957_v15, %v618_v38  ;;  %v620_v28 = vpop.f32.mrb[3].mxu1  ;;  %v959_v14 = vpop.f32.mrb[3].mxu0 }
 0x11c   : > { %v3104_v42 = vadd.f32 %v959_v14, %v620_v28  ;;  %999 = vmax.xlane.f32.xlu1 %v998_v11  ;;  %982 = vadd.xlane.f32.xlu0 %v981_v2 }
 0x11e   : > { %v626_v43 = vpop.f32.mrb[4].mxu1  ;;  %v964_v44 = vpop.f32.mrb[4].mxu0  ;;  %v984_v45 = vadd.f32 %v3104_v42, %v3102_v41  ;;  %v1001_v1 = vmax.f32 %v3102_v41, %v3104_v42 }
 0x11f   : > { %v3108_v52 = vadd.f32 %v964_v44, %v626_v43  ;;  %v628_v53 = vpop.f32.mrb[5].mxu1  ;;  %v966_v54 = vpop.f32.mrb[5].mxu0 }
 0x120   : > { %v3110_v55 = vadd.f32 %v966_v54, %v628_v53  ;;  %985 = vadd.xlane.f32.xlu0 %v984_v45  ;;  %v1034_v45 = vlaneseq }
 0x122   : > { %v634_v56 = vpop.f32.mrb[6].mxu1  ;;  %v971_v61 = vpop.f32.mrb[6].mxu0  ;;  %v987_v4 = vadd.f32 %v3110_v55, %v3108_v52  ;;  %v1004_v17 = vmax.f32 %v3108_v52, %v3110_v55 }
 0x123   : > { %v3116_v5 = vadd.f32 %v971_v61, %v634_v56  ;;  %v636_v6 = vpop.f32.mrb[7].mxu1  ;;  %v973_v9 = vpop.f32.mrb[7].mxu0 }
 0x124   : > { %v3118_v10 = vadd.f32 %v973_v9, %v636_v6  ;;  %1002 = vmax.xlane.f32.xlu0 %v1001_v1  ;;  %988 = vadd.xlane.f32.xlu1 %v987_v4  ;;  %v1035_v1 = vshrl.u32 %v1034_v45, 7 }
 0x126   : > { %v990_v18 = vadd.f32 %v3118_v10, %v3116_v5  ;;  %v1007_v19 = vmax.f32 %v3116_v5, %v3118_v10 }
 0x128   : > { %1005 = vmax.xlane.f32.xlu0 %v1004_v17  ;;  %991 = vadd.xlane.f32.xlu1 %v990_v18 }
 0x12c   : > { %1008 = vmax.xlane.f32.xlu1 %v1007_v19  ;;  %v1036_v19 = vsub.s32 0, %v1035_v1 }
 0x13e   : > { %1029 = vrot.lane.b32.xlu0 %v980_v22, %s2814_s10  ;;  %s2831_s10 = smov 29  }
 0x1a9   : > { %v983_v23 = vpop.xlane.xlu0 %982  ;;  %v1000_v24 = vpop.xlane.xlu1 %999 }
 0x1aa   : > { %v994_v25 = vmul.f32 0.00390625, %v983_v23  ;;  %v1078_v47 = vmul.f32 %v1000_v24, %v3137_v30 }
 0x1ac   : > { %v1010_v32 = vmul.f32 %v994_v25, %v3137_v30  ;;  %v1082_v20 = vsel %vm1014_vm2, %v1078_v47, 0.0 }
 0x1ad   : > { %v986_v27 = vpop.xlane.xlu0 %985 }
 0x1ae   : > { %v995_v29 = vmul.f32 0.00390625, %v986_v27  ;;  %v1015_v50 = vsel %vm1014_vm2, %v1010_v32, 0.0 }
 0x1b0   : > { %v1011_v31 = vmul.f32 %v995_v29, %v3132_v26 }
 0x1b1   : > { %v1003_v33 = vpop.xlane.xlu0 %1002  ;;  %v989_v39 = vpop.xlane.xlu1 %988 }
 0x1b2   : > { %v1079_v40 = vmul.f32 %v1003_v33, %v3132_v26  ;;  %v996_v46 = vmul.f32 0.00390625, %v989_v39  ;;  %v1016_v49 = vsel %vm1014_vm2, %v1011_v31, 0.0 }
 0x1b3   : > { %v1017_v63 = vadd.f32 %v1016_v49, %v1015_v50 }
 0x1b4   : > { %v1012_v48 = vmul.f32 %v996_v46, %v3144_v34  ;;  %v1083_v58 = vsel %vm1014_vm2, %v1079_v40, 0.0 }
 0x1b5   : > { %v1006_v16 = vpop.xlane.xlu0 %1005  ;;  %v992_v57 = vpop.xlane.xlu1 %991  ;;  %v1084_v3 = vadd.f32 %v1083_v58, %v1082_v20 }
 0x1b6   : > { %v1018_v59 = vsel %vm1014_vm2, %v1012_v48, 0.0  ;;  %v1080_v60 = vmul.f32 %v1006_v16, %v3144_v34  ;;  %v997_v62 = vmul.f32 0.00390625, %v992_v57 }
 0x1b7   : > { %v1019_v36 = vadd.f32 %v1018_v59, %v1017_v63 }
 0x1b8   : > { %v1085_v0 = vsel %vm1014_vm2, %v1080_v60, 0.0  ;;  %v1013_v21 = vmul.f32 %v997_v62, %v3154_v51 }
 0x1b9   : > { %v1009_v7 = vpop.xlane.xlu1 %1008  ;;  %v1086_v35 = vadd.f32 %v1085_v0, %v1084_v3  ;;  %v1030_v4 = vpop.permute.xlu0 %1029 }
 0x1ba   : > { %v1020_v12 = vsel %vm1014_vm2, %v1013_v21, 0.0  ;;  %v1081_v8 = vmul.f32 %v1009_v7, %v3154_v51 }
 0x1bb   : > { %v1021_v38 = vadd.f32 %v1020_v12, %v1019_v36 }
 0x1bc   : > { %v1087_v15 = vsel %vm1014_vm2, %v1081_v8, 0.0 }
 0x1bd   : > { %v1022_v11 = vrot.slane %v1021_v38, 4  ;;  %v1088_v2 = vadd.f32 %v1087_v15, %v1086_v35  ;;  %v2817_v35 = vmov 4  }
 0x1be   : > { %2779 = vset.pattern.permute.xlu1 %v2817_v35  ;;  %2780 = vset.pattern.permute.xlu0 %v2817_v35 }
 0x1bf   : > { %v1023_v28 = vadd.f32 %v1022_v11, %v1021_v38  ;;  %v1089_v14 = vrot.slane %v1088_v2, 4 }
 0x1c1   : > { %v1090_v43 = vadd.f32 %v1089_v14, %v1088_v2  ;;  %v1024_v44 = vrot.slane %v1023_v28, 2 }
 0x1c3   : > { %v1091_v53 = vrot.slane %v1090_v43, 2  ;;  %v1025_v54 = vadd.f32 %v1024_v44, %v1023_v28 }
 0x1c5   : > { %v1026_v56 = vrot.slane %v1025_v54, 1  ;;  %v1092_v61 = vadd.f32 %v1091_v53, %v1090_v43 }
 0x1c7   : > { %v1027_v6 = vadd.f32 %v1026_v56, %v1025_v54  ;;  %v1093_v9 = vrot.slane %v1092_v61, 1 }
 0x1c9   : > { %v1032_v17 = vadd.f32 %v1030_v4, %v1027_v6  ;;  %v1094_v18 = vadd.f32 %v1093_v9, %v1092_v61 }
 0x1cb   : > { %v1033_v22 = vmax.f32 %v1032_v17, 0.0  ;;  %v1095_v23 = vadd.f32 %v1094_v18, %v1030_v4 }
 0x1cd   : > { %v1096_v24 = vmax.f32 %v1095_v23, 0.0  ;;  %v1037_v25 = vrot.slane %v1033_v22, %v1036_v19 }
 0x1cf   : > { %1039 = vrot.lane.b32.xlu1 %v1037_v25, %s2815_s19  ;;  %v1100_v27 = vrot.slane %v1096_v24, %v1036_v19 }
 0x1d3   : > { %1102 = vrot.lane.b32.xlu1 %v1100_v27, %s2815_s19 }
 0x241   : > { %v1040_v29 = vpop.permute.xlu1 %1039 }
 0x242   : > { %v1042_v40 = vmul.f32 %v1040_v29, %v3137_v30  ;;  %v1043_v46 = vmul.f32 %v1040_v29, %v3132_v26  ;;  %v1044_v47 = vmul.f32 %v1040_v29, %v3144_v34  ;;  %v1045_v48 = vmul.f32 %v1040_v29, %v3154_v51 }
 0x245   : > { %v1103_v31 = vpop.permute.xlu1 %1102 }
 0x246   : > { %v1106_v32 = vmul.f32 %v1103_v31, %v3132_v26  ;;  %v1105_v33 = vmul.f32 %v1103_v31, %v3137_v30  ;;  %v1107_v39 = vmul.f32 %v1103_v31, %v3144_v34  ;;  %v1108_v49 = vmul.f32 %v1103_v31, %v3154_v51 }
 0x248   : > { %1115 = vrot.lane.b32.xlu0 %v1106_v32, %s2816_s22  ;;  %1113 = vrot.lane.b32.xlu1 %v1105_v33, %s2816_s22 }
 0x24c   : > { %1117 = vrot.lane.b32.xlu0 %v1107_v39, %s2816_s22  ;;  %1050 = vrot.lane.b32.xlu1 %v1042_v40, %s2816_s22 }
 0x250   : > { %1052 = vrot.lane.b32.xlu0 %v1043_v46, %s2816_s22  ;;  %1054 = vrot.lane.b32.xlu1 %v1044_v47, %s2816_s22 }
 0x254   : > { %1119 = vrot.lane.b32.xlu0 %v1108_v49, %s2816_s22  ;;  %1056 = vrot.lane.b32.xlu1 %v1045_v48, %s2816_s22 }
 0x2ba   : > { %v1116_v50 = vpop.permute.xlu0 %1115  ;;  %v1114_v16 = vpop.permute.xlu1 %1113 }
 0x2bb   : > { %v1125_v57 = vsel %vm1014_vm2, %v1114_v16, 0.0  ;;  %v1128_v60 = vsel %vm1014_vm2, %v1116_v50, 0.0 }
 0x2bc   : > { %1126 = vadd.xlane.f32.xlu0 %v1125_v57 }
 0x2be   : > { %v1118_v58 = vpop.permute.xlu0 %1117  ;;  %v1051_v59 = vpop.permute.xlu1 %1050 }
 0x2bf   : > { %v1062_v62 = vsel %vm1014_vm2, %v1051_v59, 0.0  ;;  %v1131_v0 = vsel %vm1014_vm2, %v1118_v58, 0.0 }
 0x2c0   : > { %1129 = vadd.xlane.f32.xlu0 %v1128_v60  ;;  %1063 = vadd.xlane.f32.xlu1 %v1062_v62 }
 0x2c2   : > { %v1053_v63 = vpop.permute.xlu0 %1052  ;;  %v1055_v20 = vpop.permute.xlu1 %1054 }
 0x2c3   : > { %v1068_v21 = vsel %vm1014_vm2, %v1055_v20, 0.0  ;;  %v1065_v8 = vsel %vm1014_vm2, %v1053_v63, 0.0 }
 0x2c4   : > { %1132 = vadd.xlane.f32.xlu0 %v1131_v0  ;;  %1069 = vadd.xlane.f32.xlu1 %v1068_v21 }
 0x2c6   : > { %v1120_v3 = vpop.permute.xlu0 %1119  ;;  %v1057_v36 = vpop.permute.xlu1 %1056 }
 0x2c7   : > { %v1134_v7 = vsel %vm1014_vm2, %v1120_v3, 0.0  ;;  %v1071_v12 = vsel %vm1014_vm2, %v1057_v36, 0.0 }
 0x2c8   : > { %1135 = vadd.xlane.f32.xlu0 %v1134_v7  ;;  %1072 = vadd.xlane.f32.xlu1 %v1071_v12 }
 0x2cc   : > { %1066 = vadd.xlane.f32.xlu0 %v1065_v8 }
 0x349   : > { %v1127_v38 = vpop.xlane.xlu0 %1126 }
 0x34a   : > { %v1137_v2 = vadd.f32 %v1127_v38, %v3137_v30 }
 0x34d   : > { %v1130_v15 = vpop.xlane.xlu0 %1129  ;;  %v1064_v11 = vpop.xlane.xlu1 %1063 }
 0x34e   : > { %v1074_v28 = vadd.f32 %v1064_v11, %v3137_v30  ;;  %v1138_v19 = vadd.f32 %v1130_v15, %v3132_v26 }
 0x350   : > { %v1141_v14 = vadd.f32 %v1137_v2, %v1074_v28 }
 0x351   : > { %v1133_v43 = vpop.xlane.xlu0 %1132  ;;  %v1070_v44 = vpop.xlane.xlu1 %1069 }
 0x352   : > { %v2525_v53 = vmul.f32 -1.442695, %v1141_v14  ;;  %v1139_v54 = vadd.f32 %v1133_v43, %v3144_v34  ;;  %v1076_v56 = vadd.f32 %v1070_v44, %v3144_v34 }
 0x354   : > { %2781 = vpow2.f32 %v2525_v53  ;;  %v1143_v61 = vadd.f32 %v1139_v54, %v1076_v56 }
 0x355   : > { %v1136_v1 = vpop.xlane.xlu0 %1135  ;;  %v1073_v4 = vpop.xlane.xlu1 %1072 }
 0x356   : > { %v2527_v6 = vmul.f32 -1.442695, %v1143_v61  ;;  %v1140_v9 = vadd.f32 %v1136_v1, %v3154_v51  ;;  %v1077_v17 = vadd.f32 %v1073_v4, %v3154_v51 }
 0x358   : > { %2783 = vpow2.f32 %v2527_v6  ;;  %v1144_v18 = vadd.f32 %v1140_v9, %v1077_v17 }
 0x359   : > { %v1067_v30 = vpop.xlane.xlu0 %1066 }
 0x35a   : > { %v2528_v22 = vmul.f32 -1.442695, %v1144_v18  ;;  %v1075_v23 = vadd.f32 %v1067_v30, %v3132_v26 }
 0x35c   : > { %2785 = vpow2.f32 %v2528_v22  ;;  %v1142_v24 = vadd.f32 %v1138_v19, %v1075_v23 }
 0x35e   : > { %v2782_v34 = vpop.eup %2781  ;;  %v2526_v25 = vmul.f32 -1.442695, %v1142_v24 }
 0x35f   : > { %v1157_v27 = vadd.f32 1.0, %v2782_v34 }
 0x360   : > { %2787 = vpow2.f32 %v2526_v25 }
 0x361   : > { %2789 = vrcp.f32 %v1157_v27 }
 0x362   : > { %v2784_v29 = vpop.eup %2783 }
 0x363   : > { %v1159_v31 = vadd.f32 1.0, %v2784_v29 }
 0x365   : > { %2791 = vrcp.f32 %v1159_v31 }
 0x366   : > { %v2786_v32 = vpop.eup %2785 }
 0x367   : > { %v1160_v51 = vadd.f32 1.0, %v2786_v32 }
 0x369   : > { %2793 = vrcp.f32 %v1160_v51  ;;  %v3320_v51 = vand.u32 127, %v1034_v45 }
 0x36a   : > { %v2788_v33 = vpop.eup %2787 }
 0x36b   : > { %v2790_v39 = vpop.eup %2789  ;;  %v1158_v40 = vadd.f32 1.0, %v2788_v33  ;;  %vm1268_vm4 = vcmp.lt.s32.totalorder %v3320_v51, 50  ;;  %vm1292_vm5 = vcmp.lt.s32.totalorder %v3320_v51, 49  ;;  %vm1316_vm6 = vcmp.lt.s32.totalorder %v3320_v51, 48 }
 0x36c   : > { %1171 = vperm.xlu1 %2779, %v2790_v39   ;;  %vm1340_vm7 = vcmp.lt.s32.totalorder %v3320_v51, 47  ;;  %vm1364_vm8 = vcmp.lt.s32.totalorder %v3320_v51, 46  ;;  %vm1388_vm9 = vcmp.lt.s32.totalorder %v3320_v51, 45  ;;  %vm1245_vm10 = vcmp.lt.s32.totalorder %v3320_v51, 51 }
 0x36d   : > { %2795 = vrcp.f32 %v1158_v40  ;;  %vm1412_vm11 = vcmp.lt.s32.totalorder %v3320_v51, 35  ;;  %vm1436_vm12 = vcmp.lt.s32.totalorder %v3320_v51, 34  ;;  %vm1460_vm13 = vcmp.lt.s32.totalorder %v3320_v51, 33 }
 0x36e   : > { %vm1484_vm14 = vcmp.lt.s32.totalorder %v3320_v51, 32  ;;  %vm1508_vm15 = vcmp.lt.s32.totalorder %v3320_v51, 31  ;;  %vm1532_vm0 = vcmp.lt.s32.totalorder %v3320_v51, 30  ;;  %vm1556_vm1 = vcmp.lt.s32.totalorder %v3320_v51, 29 }
 0x36f   : > { %v2792_v46 = vpop.eup %2791  ;;  %vm1580_vm2 = vcmp.lt.s32.totalorder %v3320_v51, 19 }
 0x370   : > { %1181 = vperm.xlu1 %2779, %v2792_v46  }
 0x373   : > { %v2794_v26 = vpop.eup %2793 }
 0x374   : > { %1186 = vperm.xlu1 %2779, %v2794_v26  }
 0x377   : > { %v2796_v47 = vpop.eup %2795 }
 0x378   : > { %1176 = vperm.xlu0 %2780, %v2796_v47  }
 0x3eb   : > { %v1172_v49 = vpop.permute.xlu1 %1171 }
 0x3ec   : > { %v3207_v58 = vmul.f32 %v3094_v13, %v1172_v49  ;;  %v3210_v59 = vmul.f32 %v3096_v37, %v1172_v49 }
 0x3ee   : > { %4046 = vst [vmem:[#allocation5_spill] sm:$0xff] %v3210_v59 }
 0x3ef   : > { %v1182_v48 = vpop.permute.xlu1 %1181 }
 0x3f0   : > { %v3201_v50 = vmul.f32 %v3108_v52, %v1182_v48  ;;  %v3204_v16 = vmul.f32 %v3110_v55, %v1182_v48 }
 0x3f2   : > { %4044 = vst [vmem:[#allocation3_spill] sm:$0xff] %v3201_v50  ;;  %4045 = vst [vmem:[#allocation4_spill] sm:$0xff] %v3204_v16  ;;  %v1197_v13 = vmax.f32 %v3207_v58, %v3201_v50  ;;  %v1206_v37 = vmax.f32 %v3210_v59, %v3204_v16 }
 0x3f3   : > { %v1187_v57 = vpop.permute.xlu1 %1186 }
 0x3f4   : > { %v3213_v62 = vmul.f32 %v3116_v5, %v1187_v57  ;;  %v3216_v63 = vmul.f32 %v3118_v10, %v1187_v57 }
 0x3f6   : > { %4047 = vst [vmem:[#allocation6_spill] sm:$0xff] %v3213_v62  ;;  %4048 = vst [vmem:[#allocation7_spill] sm:$0xff] %v3216_v63 }
 0x3f7   : > { %v1177_v60 = vpop.permute.xlu0 %1176 }
 0x3f8   : > { %v3219_v52 = vmul.f32 %v3102_v41, %v1177_v60  ;;  %v3222_v55 = vmul.f32 %v3104_v42, %v1177_v60 }
 0x3fa   : > { %4049 = vst [vmem:[#allocation8_spill] sm:$0xff] %v3219_v52  ;;  %4050 = vst [vmem:[#allocation9_spill] sm:$0xff] %v3222_v55  ;;  %v1198_v20 = vmax.f32 %v3219_v52, %v3213_v62  ;;  %v1207_v5 = vmax.f32 %v3222_v55, %v3216_v63  ;;  %v1215_v10 = vadd.f32 %v3219_v52, %v3207_v58 }
 0x3fb   : > { %v1224_v41 = vadd.f32 %v3222_v55, %v3210_v59 }
 0x3fc   : > { %v1199_v42 = vmax.f32 %v1197_v13, %v1198_v20  ;;  %v1208_v0 = vmax.f32 %v1206_v37, %v1207_v5  ;;  %v1216_v21 = vadd.f32 %v1215_v10, %v3201_v50 }
 0x3fd   : > { %v1225_v3 = vadd.f32 %v1224_v41, %v3204_v16  ;;  %v2531_v41 = vld.sshfl [vmem:[%s4034_s3 + $0x4] sm:$0x33 pattern:$0x76325410] }
 0x3fe   : > { %v1200_v36 = vrot.slane %v1199_v42, 4  ;;  %v1209_v7 = vrot.slane %v1208_v0, 4  ;;  %v1217_v12 = vadd.f32 %v1216_v21, %v3213_v62  ;;  %v3807_v16 = vld.sshfl [vmem:[%s4034_s3 + $0xbc] sm:$0x33 pattern:$0x76325410] }
 0x3ff   : > { %v1226_v8 = vadd.f32 %v1225_v3, %v3216_v63  ;;  %v2533_v3 = vld.sshfl [vmem:[%s4034_s3 + $0x8] sm:$0x33 pattern:$0x76325410] }
 0x400   : > { %v1201_v35 = vmax.f32 %v1199_v42, %v1200_v36  ;;  %v1210_v38 = vmax.f32 %v1208_v0, %v1209_v7  ;;  %v1218_v15 = vrot.slane %v1217_v12, 4  ;;  %v2539_v42 = vld.sshfl [vmem:[%s4034_s3 + $0x14] sm:$0x33 pattern:$0x76325410] }
 0x401   : > { %v1227_v11 = vrot.slane %v1226_v8, 4 }
 0x402   : > { %v1202_v2 = vrot.slane %v1201_v35, 2  ;;  %v1219_v28 = vadd.f32 %v1218_v15, %v1217_v12  ;;  %v1211_v44 = vrot.slane %v1210_v38, 2  ;;  %v1281_v12 = vcombine.high %v2531_v41, %v2531_v41  ;;  %v2535_v15 = vld.sshfl [vmem:[%s4034_s3 + $0xc] sm:$0x33 pattern:$0x76325410] }
 0x403   : > { %v1228_v14 = vadd.f32 %v1227_v11, %v1226_v8  ;;  %v1377_v8 = vcombine.high %v2539_v42, %v2539_v42 }
 0x404   : > { %v1203_v43 = vmax.f32 %v1201_v35, %v1202_v2  ;;  %v1220_v53 = vrot.slane %v1219_v28, 2  ;;  %v1212_v4 = vmax.f32 %v1210_v38, %v1211_v44  ;;  %v2541_v35 = vld.sshfl [vmem:[%s4034_s3 + $0x18] sm:$0x33 pattern:$0x76325410]  ;;  %v1305_v38 = vcombine.high %v2533_v3, %v2533_v3 }
 0x405   : > { %v1229_v54 = vrot.slane %v1228_v14, 2 }
 0x406   : > { %v1221_v56 = vadd.f32 %v1220_v53, %v1219_v28  ;;  %v1204_v1 = vrot.slane %v1203_v43, 1  ;;  %v1213_v19 = vrot.slane %v1212_v4, 1  ;;  %v1401_v53 = vcombine.high %v2541_v35, %v2541_v35 }
 0x407   : > { %v1230_v61 = vadd.f32 %v1229_v54, %v1228_v14  ;;  %v2537_v14 = vld.sshfl [vmem:[%s4034_s3 + $0x10] sm:$0x33 pattern:$0x76325410] }
 0x408   : > { %v1222_v6 = vrot.slane %v1221_v56, 1  ;;  %v1205_v30 = vmax.f32 %v1203_v43, %v1204_v1  ;;  %v1214_v34 = vmax.f32 %v1212_v4, %v1213_v19  ;;  %v2543_v1 = vld.sshfl [vmem:[%s4034_s3 + $0x1c] sm:$0x33 pattern:$0x76325410] }
 0x409   : > { %v1231_v9 = vrot.slane %v1230_v61, 1  ;;  %v2529_v4 = vld.sshfl [vmem:[%s4034_s3] sm:$0x33 pattern:$0x76325410] }
 0x40a   : > { %v1223_v17 = vadd.f32 %v1222_v6, %v1221_v56  ;;  %v1329_v6 = vcombine.high %v2535_v15, %v2535_v15 }
 0x40b   : > { %v1232_v18 = vadd.f32 %v1231_v9, %v1230_v61  ;;  %v1353_v9 = vcombine.high %v2537_v14, %v2537_v14 }
 0x40c   : > { %v1234_v22 = vmul.f32 0.03125, %v1223_v17 }
 0x40d   : > { %v1235_v23 = vmul.f32 0.03125, %v1232_v18 }
 0x40e   : > { %v3240_v24 = vsel %vm1236_vm3, %v1205_v30, %v1234_v22  ;;  %v2545_v22 = vld.sshfl [vmem:[%s4034_s3 + $0x20] sm:$0x33 pattern:$0x76325410] }
 0x40f   : > { %1312 = vrot.lane.b32.xlu0 %v3240_v24, %s2818_s23  ;;  %1239 = vrot.lane.b32.xlu1 %v3240_v24, %s2819_s4  ;;  %v3244_v25 = vsel %vm1236_vm3, %v1214_v34, %v1235_v23  ;;  %vm1604_vm3 = vcmp.lt.s32.totalorder %v3320_v51, 18 }
 0x413   : > { %1336 = vrot.lane.b32.xlu0 %v3240_v24, %s2820_s24  ;;  %1241 = vrot.lane.b32.xlu1 %v3244_v25, %s2819_s4  ;;  %s2841_s4 = smov 127  }
 0x417   : > { %1360 = vrot.lane.b32.xlu0 %v3240_v24, %s2821_s25  ;;  %1264 = vrot.lane.b32.xlu1 %v3240_v24, %s2822_s26 }
 0x41b   : > { %1384 = vrot.lane.b32.xlu0 %v3240_v24, %s2823_s27  ;;  %1266 = vrot.lane.b32.xlu1 %v3244_v25, %s2822_s26  ;;  %s2844_s26 = smov 114  }
 0x41f   : > { %1408 = vrot.lane.b32.xlu0 %v3240_v24, %s2824_s28  ;;  %1288 = vrot.lane.b32.xlu1 %v3240_v24, %s2825_s29 }
 0x423   : > { %1432 = vrot.lane.b32.xlu0 %v3240_v24, %s2826_s30  ;;  %1290 = vrot.lane.b32.xlu1 %v3244_v25, %s2825_s29  ;;  %s2847_s29 = smov 111  }
 0x427   : > { %1456 = vrot.lane.b32.xlu0 %v3240_v24, %s2827_s6  ;;  %1314 = vrot.lane.b32.xlu1 %v3244_v25, %s2818_s23  ;;  %s2840_s23 = smov 1  }
 0x42b   : > { %1480 = vrot.lane.b32.xlu0 %v3240_v24, %s2828_s7  ;;  %1338 = vrot.lane.b32.xlu1 %v3244_v25, %s2820_s24  ;;  %s2842_s24 = smov 125  }
 0x42f   : > { %1504 = vrot.lane.b32.xlu0 %v3240_v24, %s2829_s8  ;;  %1362 = vrot.lane.b32.xlu1 %v3244_v25, %s2821_s25  ;;  %s2843_s25 = smov 115  }
 0x433   : > { %1528 = vrot.lane.b32.xlu0 %v3240_v24, %s2830_s9  ;;  %1386 = vrot.lane.b32.xlu1 %v3244_v25, %s2823_s27  ;;  %s2845_s27 = smov 113  }
 0x437   : > { %1552 = vrot.lane.b32.xlu0 %v3240_v24, %s2831_s10  ;;  %1410 = vrot.lane.b32.xlu1 %v3244_v25, %s2824_s28  ;;  %s2846_s28 = smov 112  }
 0x43b   : > { %1576 = vrot.lane.b32.xlu0 %v3240_v24, %s2832_s11  ;;  %1434 = vrot.lane.b32.xlu1 %v3244_v25, %s2826_s30  ;;  %s2849_s30 = smov 109  }
 0x43f   : > { %1600 = vrot.lane.b32.xlu0 %v3240_v24, %s2833_s12  ;;  %1458 = vrot.lane.b32.xlu1 %v3244_v25, %s2827_s6  ;;  %s2851_s6 = smov 98  }
 0x443   : > { %1624 = vrot.lane.b32.xlu0 %v3240_v24, %s2834_s13  ;;  %1482 = vrot.lane.b32.xlu1 %v3244_v25, %s2828_s7  ;;  %s2852_s7 = smov 97  }
 0x447   : > { %1648 = vrot.lane.b32.xlu0 %v3240_v24, %s2835_s14  ;;  %1506 = vrot.lane.b32.xlu1 %v3244_v25, %s2829_s8  ;;  %s2853_s8 = smov 96  }
 0x44b   : > { %1672 = vrot.lane.b32.xlu0 %v3240_v24, %s2836_s15  ;;  %1530 = vrot.lane.b32.xlu1 %v3244_v25, %s2830_s9  ;;  %s2857_s9 = smov 83  }
 0x44f   : > { %1696 = vrot.lane.b32.xlu0 %v3240_v24, %s2837_s16  ;;  %1554 = vrot.lane.b32.xlu1 %v3244_v25, %s2831_s10 }
 0x453   : > { %1720 = vrot.lane.b32.xlu0 %v3240_v24, %s2838_s17  ;;  %1578 = vrot.lane.b32.xlu1 %v3244_v25, %s2832_s11  ;;  %s2854_s11 = smov 95  }
 0x457   : > { %1744 = vrot.lane.b32.xlu0 %v3240_v24, %s2839_s18  ;;  %1602 = vrot.lane.b32.xlu1 %v3244_v25, %s2833_s12 }
 0x45b   : > { %1768 = vrot.lane.b32.xlu0 %v3240_v24, %s2815_s19  ;;  %1626 = vrot.lane.b32.xlu1 %v3244_v25, %s2834_s13 }
 0x45f   : > { %1792 = vrot.lane.b32.xlu0 %v3240_v24, %s2840_s23  ;;  %1650 = vrot.lane.b32.xlu1 %v3244_v25, %s2835_s14 }
 0x463   : > { %1833 = vrot.lane.b32.xlu0 %v3240_v24, %s2841_s4  ;;  %1674 = vrot.lane.b32.xlu1 %v3244_v25, %s2836_s15  ;;  %s2860_s15 = smov 80  }
 0x467   : > { %1857 = vrot.lane.b32.xlu0 %v3240_v24, %s2816_s22  ;;  %1698 = vrot.lane.b32.xlu1 %v3244_v25, %s2837_s16  ;;  %s2855_s16 = smov 94  }
 0x46b   : > { %1881 = vrot.lane.b32.xlu0 %v3240_v24, %s2842_s24  ;;  %1722 = vrot.lane.b32.xlu1 %v3244_v25, %s2838_s17 }
 0x46f   : > { %1905 = vrot.lane.b32.xlu0 %v3240_v24, %s2843_s25  ;;  %1746 = vrot.lane.b32.xlu1 %v3244_v25, %s2839_s18 }
 0x473   : > { %1929 = vrot.lane.b32.xlu0 %v3240_v24, %s2844_s26  ;;  %1770 = vrot.lane.b32.xlu1 %v3244_v25, %s2815_s19  ;;  %s2848_s19 = smov 110  }
 0x477   : > { %1953 = vrot.lane.b32.xlu0 %v3240_v24, %s2845_s27  ;;  %1794 = vrot.lane.b32.xlu1 %v3244_v25, %s2840_s23 }
 0x47b   : > { %1977 = vrot.lane.b32.xlu0 %v3240_v24, %s2846_s28  ;;  %1835 = vrot.lane.b32.xlu1 %v3244_v25, %s2841_s4  ;;  %s2862_s4 = smov 78  }
 0x47f   : > { %2001 = vrot.lane.b32.xlu0 %v3240_v24, %s2847_s29  ;;  %1859 = vrot.lane.b32.xlu1 %v3244_v25, %s2816_s22  ;;  %s2850_s22 = smov 99  }
 0x481   : > { %v1313_v27 = vpop.permute.xlu0 %1312  ;;  %v3309_v29 = vpop.permute.xlu1 %1239 }
 0x483   : > { %2025 = vrot.lane.b32.xlu0 %v3240_v24, %s2848_s19  ;;  %1883 = vrot.lane.b32.xlu1 %v3244_v25, %s2842_s24  ;;  %s2430_s24 = sld [smem:[#allocation2]] }
 0x485   : > { %v1337_v31 = vpop.permute.xlu0 %1336  ;;  %v3314_v32 = vpop.permute.xlu1 %1241 }
 0x487   : > { %2049 = vrot.lane.b32.xlu0 %v3240_v24, %s2849_s30  ;;  %1907 = vrot.lane.b32.xlu1 %v3244_v25, %s2843_s25  ;;  %s2863_s25 = smov 77  }
 0x489   : > { %v1361_v33 = vpop.permute.xlu0 %1360  ;;  %v1265_v39 = vpop.permute.xlu1 %1264 }
 0x48b   : > { %2073 = vrot.lane.b32.xlu0 %v3240_v24, %s2850_s22  ;;  %1931 = vrot.lane.b32.xlu1 %v3244_v25, %s2844_s26  ;;  %s2856_s26 = smov 93  }
 0x48d   : > { %v3326_v40 = vpop.permute.xlu0 %1384  ;;  %v1267_v46 = vpop.permute.xlu1 %1266 }
 0x48e   : > { %v1269_v26 = vsel %vm1268_vm4, %v1265_v39, %v1267_v46  ;;  %v1270_v47 = vsel %vm1268_vm4, %v1267_v46, %v1265_v39  ;;  %vm1628_vm4 = vcmp.lt.s32.totalorder %v3320_v51, 17 }
 0x48f   : > { %2097 = vrot.lane.b32.xlu0 %v3240_v24, %s2851_s6  ;;  %1955 = vrot.lane.b32.xlu1 %v3244_v25, %s2845_s27  ;;  %v1284_v28 = vmul.f32 %v2531_v41, %v1270_v47  ;;  %v1285_v54 = vmul.f32 %v1281_v12, %v1269_v26  ;;  %v1257_v26 = vcombine.high %v2529_v4, %v2529_v4 }
 0x490   : > { %v1246_v47 = vsel %vm1245_vm10, %v3309_v29, %v3314_v32 }
 0x491   : > { %v3332_v45 = vpop.permute.xlu0 %1408  ;;  %v1289_v49 = vpop.permute.xlu1 %1288 }
 0x493   : > { %2121 = vrot.lane.b32.xlu0 %v3240_v24, %s2852_s7  ;;  %1979 = vrot.lane.b32.xlu1 %v3244_v25, %s2846_s28 }
 0x495   : > { %v3339_v48 = vpop.permute.xlu0 %1432  ;;  %v1291_v57 = vpop.permute.xlu1 %1290 }
 0x496   : > { %v1293_v60 = vsel %vm1292_vm5, %v1289_v49, %v1291_v57  ;;  %v1294_v13 = vsel %vm1292_vm5, %v1291_v57, %v1289_v49  ;;  %v1247_v49 = vsel %vm1245_vm10, %v3314_v32, %v3309_v29  ;;  %v2547_v29 = vld.sshfl [vmem:[%s4034_s3 + $0x24] sm:$0x33 pattern:$0x76325410]  ;;  %vm1652_vm5 = vcmp.lt.s32.totalorder %v3320_v51, 16 }
 0x497   : > { %2145 = vrot.lane.b32.xlu0 %v3240_v24, %s2853_s8  ;;  %2003 = vrot.lane.b32.xlu1 %v3244_v25, %s2847_s29  ;;  %v1308_v23 = vmul.f32 %v2533_v3, %v1294_v13  ;;  %v1260_v32 = vmul.f32 %v2529_v4, %v1247_v49  ;;  %vm1772_vm10 = vcmp.lt.s32.totalorder %v3320_v51, 2 }
 0x499   : > { %v3346_v37 = vpop.permute.xlu0 %1456  ;;  %v1315_v20 = vpop.permute.xlu1 %1314 }
 0x49a   : > { %v3348_v5 = vsel %vm1316_vm6, %v1313_v27, %v1315_v20  ;;  %v1318_v10 = vsel %vm1316_vm6, %v1315_v20, %v1313_v27  ;;  %vm1676_vm6 = vcmp.lt.s32.totalorder %v3320_v51, 15 }
 0x49b   : > { %2169 = vrot.lane.b32.xlu0 %v3240_v24, %s2854_s11  ;;  %2027 = vrot.lane.b32.xlu1 %v3244_v25, %s2848_s19  ;;  %v1332_v57 = vmul.f32 %v2535_v15, %v1318_v10 }
 0x49d   : > { %v3361_v0 = vpop.permute.xlu0 %1480  ;;  %v1339_v21 = vpop.permute.xlu1 %1338 }
 0x49e   : > { %v1341_v36 = vsel %vm1340_vm7, %v1337_v31, %v1339_v21  ;;  %v1342_v7 = vsel %vm1340_vm7, %v1339_v21, %v1337_v31  ;;  %v1425_v31 = vcombine.high %v2543_v1, %v2543_v1  ;;  %vm1700_vm7 = vcmp.lt.s32.totalorder %v3320_v51, 14 }
 0x49f   : > { %2193 = vrot.lane.b32.xlu0 %v3240_v24, %s2855_s16  ;;  %2051 = vrot.lane.b32.xlu1 %v3244_v25, %s2849_s30  ;;  %v1356_v21 = vmul.f32 %v2537_v14, %v1342_v7  ;;  %v1473_v14 = vcombine.high %v2547_v29, %v2547_v29 }
 0x4a1   : > { %v3377_v11 = vpop.permute.xlu0 %1504  ;;  %v1363_v2 = vpop.permute.xlu1 %1362  ;;  %v1358_v15 = vadd.f32 %v1356_v21, %v1260_v32 }
 0x4a2   : > { %v1365_v43 = vsel %vm1364_vm8, %v1361_v33, %v1363_v2  ;;  %v1366_v44 = vsel %vm1364_vm8, %v1363_v2, %v1361_v33  ;;  %v1309_v33 = vmul.f32 %v1305_v38, %v1293_v60  ;;  %vm1724_vm8 = vcmp.lt.s32.totalorder %v3320_v51, 13 }
 0x4a3   : > { %v1380_v56 = vmul.f32 %v2539_v42, %v1366_v44  ;;  %v1381_v61 = vmul.f32 %v1377_v8, %v1365_v43  ;;  %2217 = vrot.lane.b32.xlu0 %v3240_v24, %s2856_s26  ;;  %2075 = vrot.lane.b32.xlu1 %v3244_v25, %s2850_s22  ;;  %v1333_v42 = vmul.f32 %v1329_v6, %v3348_v5 }
 0x4a4   : > { %v1357_v8 = vmul.f32 %v1353_v9, %v1341_v36  ;;  %v1261_v5 = vmul.f32 %v1257_v26, %v1246_v47 }
 0x4a5   : > { %v3394_v17 = vadd.f32 %v1380_v56, %v1284_v28  ;;  %v3396_v18 = vadd.f32 %v1381_v61, %v1285_v54  ;;  %v3398_v30 = vpop.permute.xlu0 %1528  ;;  %v1387_v19 = vpop.permute.xlu1 %1386  ;;  %v2549_v54 = vld.sshfl [vmem:[%s4034_s3 + $0x28] sm:$0x33 pattern:$0x76325410] }
 0x4a6   : > { %v1389_v34 = vsel %vm1388_vm9, %v3326_v40, %v1387_v19  ;;  %v1390_v27 = vsel %vm1388_vm9, %v1387_v19, %v3326_v40  ;;  %v1449_v40 = vcombine.high %v2545_v22, %v2545_v22  ;;  %v1359_v43 = vadd.f32 %v1357_v8, %v1261_v5 }
 0x4a7   : > { %v1404_v39 = vmul.f32 %v2541_v35, %v1390_v27  ;;  %v1405_v46 = vmul.f32 %v1401_v53, %v1389_v34  ;;  %2241 = vrot.lane.b32.xlu0 %v3240_v24, %s2857_s9  ;;  %2099 = vrot.lane.b32.xlu1 %v3244_v25, %s2851_s6  ;;  %s2858_s6 = smov 82   ;;  %vm1748_vm9 = vcmp.lt.s32.totalorder %v3320_v51, 3 }
 0x4a9   : > { %v1406_v60 = vadd.f32 %v1404_v39, %v1308_v23  ;;  %v1407_v13 = vadd.f32 %v1405_v46, %v1309_v33  ;;  %v3418_v20 = vpop.permute.xlu0 %1552  ;;  %v1411_v41 = vpop.permute.xlu1 %1410  ;;  %v2551_v23 = vld.sshfl [vmem:[%s4034_s3 + $0x2c] sm:$0x33 pattern:$0x76325410] }
 0x4aa   : > { %v1413_v3 = vsel %vm1412_vm11, %v3332_v45, %v1411_v41  ;;  %v1414_v12 = vsel %vm1412_vm11, %v1411_v41, %v3332_v45  ;;  %vm1796_vm11 = vcmp.lt.s32.totalorder %v3320_v51, 1 }
 0x4ab   : > { %v1428_v35 = vmul.f32 %v2543_v1, %v1414_v12  ;;  %v1429_v38 = vmul.f32 %v1425_v31, %v1413_v3  ;;  %2265 = vrot.lane.b32.xlu0 %v3240_v24, %s2858_s6  ;;  %2123 = vrot.lane.b32.xlu1 %v3244_v25, %s2852_s7  ;;  %s2859_s7 = smov 81  }
 0x4ad   : > { %v1430_v10 = vadd.f32 %v1428_v35, %v1332_v57  ;;  %v1431_v45 = vadd.f32 %v1429_v38, %v1333_v42  ;;  %v3431_v36 = vpop.permute.xlu0 %1576  ;;  %v1435_v7 = vpop.permute.xlu1 %1434 }
 0x4ae   : > { %v1437_v2 = vsel %vm1436_vm12, %v3339_v48, %v1435_v7  ;;  %v1438_v28 = vsel %vm1436_vm12, %v1435_v7, %v3339_v48  ;;  %vm1837_vm12 = vcmp.lt.s32.totalorder %v3320_v51, 127 }
 0x4af   : > { %v1452_v44 = vmul.f32 %v2545_v22, %v1438_v28  ;;  %v1453_v53 = vmul.f32 %v1449_v40, %v1437_v2  ;;  %2289 = vrot.lane.b32.xlu0 %v3240_v24, %s2859_s7  ;;  %2147 = vrot.lane.b32.xlu1 %v3244_v25, %s2853_s8  ;;  %v1497_v22 = vcombine.high %v2549_v54, %v2549_v54 }
 0x4b1   : > { %v1454_v56 = vadd.f32 %v1452_v44, %v1358_v15  ;;  %v1455_v61 = vadd.f32 %v1453_v53, %v1359_v43  ;;  %v3443_v48 = vpop.permute.xlu0 %1600  ;;  %v1459_v1 = vpop.permute.xlu1 %1458  ;;  %v2559_v53 = vld.sshfl [vmem:[%s4034_s3 + $0x3c] sm:$0x33 pattern:$0x76325410] }
 0x4b2   : > { %v1461_v4 = vsel %vm1460_vm13, %v3346_v37, %v1459_v1  ;;  %v1462_v6 = vsel %vm1460_vm13, %v1459_v1, %v3346_v37  ;;  %vm1861_vm13 = vcmp.lt.s32.totalorder %v3320_v51, 126 }
 0x4b3   : > { %v1476_v9 = vmul.f32 %v2547_v29, %v1462_v6  ;;  %v1477_v19 = vmul.f32 %v1473_v14, %v1461_v4  ;;  %2313 = vrot.lane.b32.xlu0 %v3240_v24, %s2860_s15  ;;  %2171 = vrot.lane.b32.xlu1 %v3244_v25, %s2854_s11  ;;  %s2861_s11 = smov 79  }
 0x4b5   : > { %v1478_v34 = vadd.f32 %v1476_v9, %v3394_v17  ;;  %v1479_v37 = vadd.f32 %v1477_v19, %v3396_v18  ;;  %v3457_v27 = vpop.permute.xlu0 %1624  ;;  %v1483_v31 = vpop.permute.xlu1 %1482  ;;  %v1521_v17 = vcombine.high %v2551_v23, %v2551_v23  ;;  %v2553_v18 = vld.sshfl [vmem:[%s4034_s3 + $0x30] sm:$0x33 pattern:$0x76325410]  ;;  %v1617_v19 = vcombine.high %v2559_v53, %v2559_v53 }
 0x4b6   : > { %v1485_v33 = vsel %vm1484_vm14, %v3361_v0, %v1483_v31  ;;  %v1486_v39 = vsel %vm1484_vm14, %v1483_v31, %v3361_v0  ;;  %vm1885_vm14 = vcmp.lt.s32.totalorder %v3320_v51, 125 }
 0x4b7   : > { %v1500_v46 = vmul.f32 %v2549_v54, %v1486_v39  ;;  %v1501_v26 = vmul.f32 %v1497_v22, %v1485_v33  ;;  %2337 = vrot.lane.b32.xlu0 %v3240_v24, %s2861_s11  ;;  %2195 = vrot.lane.b32.xlu1 %v3244_v25, %s2855_s16  ;;  %v2561_v22 = vld.sshfl [vmem:[%s4034_s3 + $0x40] sm:$0x33 pattern:$0x76325410] }
 0x4b9   : > { %v1502_v47 = vadd.f32 %v1500_v46, %v1406_v60  ;;  %v1503_v40 = vadd.f32 %v1501_v26, %v1407_v13  ;;  %v3469_v49 = vpop.permute.xlu0 %1648  ;;  %v1507_v0 = vpop.permute.xlu1 %1506  ;;  %v1545_v60 = vcombine.high %v2553_v18, %v2553_v18  ;;  %v2555_v13 = vld.sshfl [vmem:[%s4034_s3 + $0x34] sm:$0x33 pattern:$0x76325410]  ;;  %v1641_v26 = vcombine.high %v2561_v22, %v2561_v22 }
 0x4ba   : > { %v1509_v57 = vsel %vm1508_vm15, %v3377_v11, %v1507_v0  ;;  %v1510_v41 = vsel %vm1508_vm15, %v1507_v0, %v3377_v11  ;;  %v1569_v5 = vcombine.high %v2555_v13, %v2555_v13  ;;  %vm1909_vm15 = vcmp.lt.s32.totalorder %v3320_v51, 115 }
 0x4bb   : > { %v1524_v42 = vmul.f32 %v2551_v23, %v1510_v41  ;;  %v1525_v21 = vmul.f32 %v1521_v17, %v1509_v57  ;;  %2361 = vrot.lane.b32.xlu0 %v3240_v24, %s2862_s4  ;;  %2219 = vrot.lane.b32.xlu1 %v3244_v25, %s2856_s26  ;;  %v2563_v17 = vld.sshfl [vmem:[%s4034_s3 + $0x44] sm:$0x33 pattern:$0x76325410] }
 0x4bd   : > { %v1526_v3 = vadd.f32 %v1524_v42, %v1430_v10  ;;  %v1527_v12 = vadd.f32 %v1525_v21, %v1431_v45  ;;  %v3481_v8 = vpop.permute.xlu0 %1672  ;;  %v1531_v11 = vpop.permute.xlu1 %1530  ;;  %v2557_v10 = vld.sshfl [vmem:[%s4034_s3 + $0x38] sm:$0x33 pattern:$0x76325410]  ;;  %v1665_v21 = vcombine.high %v2563_v17, %v2563_v17 }
 0x4be   : > { %v1533_v35 = vsel %vm1532_vm0, %v3398_v30, %v1531_v11  ;;  %v1534_v38 = vsel %vm1532_vm0, %v1531_v11, %v3398_v30  ;;  %v1593_v44 = vcombine.high %v2557_v10, %v2557_v10  ;;  %vm1933_vm0 = vcmp.lt.s32.totalorder %v3320_v51, 114 }
 0x4bf   : > { %v1548_v29 = vmul.f32 %v2553_v18, %v1534_v38  ;;  %v1549_v32 = vmul.f32 %v1545_v60, %v1533_v35  ;;  %2385 = vrot.lane.b32.xlu0 %v3240_v24, %s2863_s25  ;;  %2243 = vrot.lane.b32.xlu1 %v3244_v25, %s2857_s9  ;;  %v2565_v60 = vld.sshfl [vmem:[%s4034_s3 + $0x48] sm:$0x33 pattern:$0x76325410] }
 0x4c1   : > { %v1550_v45 = vadd.f32 %v1548_v29, %v1454_v56  ;;  %v1551_v7 = vadd.f32 %v1549_v32, %v1455_v61  ;;  %v3493_v15 = vpop.permute.xlu0 %1696  ;;  %v1555_v30 = vpop.permute.xlu1 %1554  ;;  %v1689_v32 = vcombine.high %v2565_v60, %v2565_v60 }
 0x4c2   : > { %v1557_v2 = vsel %vm1556_vm1, %v3418_v20, %v1555_v30  ;;  %v1558_v28 = vsel %vm1556_vm1, %v1555_v30, %v3418_v20  ;;  %vm1957_vm1 = vcmp.lt.s32.totalorder %v3320_v51, 113 }
 0x4c3   : > { %v1572_v14 = vmul.f32 %v2555_v13, %v1558_v28  ;;  %v1573_v43 = vmul.f32 %v1569_v5, %v1557_v2  ;;  %2267 = vrot.lane.b32.xlu1 %v3244_v25, %s2858_s6  ;;  %v2567_v5 = vld.sshfl [vmem:[%s4034_s3 + $0x4c] sm:$0x33 pattern:$0x76325410] }
 0x4c5   : > { %v1574_v54 = vadd.f32 %v1572_v14, %v1478_v34  ;;  %v1575_v56 = vadd.f32 %v1573_v43, %v1479_v37  ;;  %v3503_v61 = vpop.permute.xlu0 %1720  ;;  %v1579_v1 = vpop.permute.xlu1 %1578  ;;  %v1713_v43 = vcombine.high %v2567_v5, %v2567_v5 }
 0x4c6   : > { %v1581_v4 = vsel %vm1580_vm2, %v3431_v36, %v1579_v1  ;;  %v1582_v20 = vsel %vm1580_vm2, %v1579_v1, %v3431_v36  ;;  %vm1981_vm2 = vcmp.lt.s32.totalorder %v3320_v51, 112 }
 0x4c7   : > { %v1596_v6 = vmul.f32 %v2557_v10, %v1582_v20  ;;  %v1597_v9 = vmul.f32 %v1593_v44, %v1581_v4  ;;  %2291 = vrot.lane.b32.xlu1 %v3244_v25, %s2859_s7  ;;  %v2569_v44 = vld.sshfl [vmem:[%s4034_s3 + $0x50] sm:$0x33 pattern:$0x76325410] }
 0x4c9   : > { %v1598_v23 = vadd.f32 %v1596_v6, %v1502_v47  ;;  %v1599_v34 = vadd.f32 %v1597_v9, %v1503_v40  ;;  %v3513_v37 = vpop.permute.xlu0 %1744  ;;  %v1603_v31 = vpop.permute.xlu1 %1602  ;;  %v1737_v9 = vcombine.high %v2569_v44, %v2569_v44 }
 0x4ca   : > { %v1605_v33 = vsel %vm1604_vm3, %v3443_v48, %v1603_v31  ;;  %v1606_v36 = vsel %vm1604_vm3, %v1603_v31, %v3443_v48  ;;  %vm2005_vm3 = vcmp.lt.s32.totalorder %v3320_v51, 111 }
 0x4cb   : > { %v1620_v39 = vmul.f32 %v2559_v53, %v1606_v36  ;;  %v1621_v46 = vmul.f32 %v1617_v19, %v1605_v33  ;;  %2315 = vrot.lane.b32.xlu1 %v3244_v25, %s2860_s15  ;;  %v2571_v19 = vld.sshfl [vmem:[%s4034_s3 + $0x54] sm:$0x33 pattern:$0x76325410] }
 0x4cd   : > { %v1622_v18 = vadd.f32 %v1620_v39, %v1526_v3  ;;  %v1623_v47 = vadd.f32 %v1621_v46, %v1527_v12  ;;  %v3523_v40 = vpop.permute.xlu0 %1768  ;;  %v1627_v0 = vpop.permute.xlu1 %1626  ;;  %v1761_v46 = vcombine.high %v2571_v19, %v2571_v19 }
 0x4ce   : > { %v1629_v57 = vsel %vm1628_vm4, %v3457_v27, %v1627_v0  ;;  %v1630_v48 = vsel %vm1628_vm4, %v1627_v0, %v3457_v27  ;;  %vm2029_vm4 = vcmp.lt.s32.totalorder %v3320_v51, 110 }
 0x4cf   : > { %v1644_v41 = vmul.f32 %v2561_v22, %v1630_v48  ;;  %v1645_v42 = vmul.f32 %v1641_v26, %v1629_v57  ;;  %2339 = vrot.lane.b32.xlu1 %v3244_v25, %s2861_s11  ;;  %v2573_v26 = vld.sshfl [vmem:[%s4034_s3 + $0x58] sm:$0x33 pattern:$0x76325410] }
 0x4d1   : > { %v1646_v13 = vadd.f32 %v1644_v41, %v1550_v45  ;;  %v1647_v3 = vadd.f32 %v1645_v42, %v1551_v7  ;;  %v3533_v12 = vpop.permute.xlu0 %1792  ;;  %v1651_v11 = vpop.permute.xlu1 %1650  ;;  %v1785_v42 = vcombine.high %v2573_v26, %v2573_v26 }
 0x4d2   : > { %v1653_v35 = vsel %vm1652_vm5, %v3469_v49, %v1651_v11  ;;  %v1654_v27 = vsel %vm1652_vm5, %v1651_v11, %v3469_v49  ;;  %vm2053_vm5 = vcmp.lt.s32.totalorder %v3320_v51, 109 }
 0x4d3   : > { %v1668_v38 = vmul.f32 %v2563_v17, %v1654_v27  ;;  %v1669_v29 = vmul.f32 %v1665_v21, %v1653_v35  ;;  %2363 = vrot.lane.b32.xlu1 %v3244_v25, %s2862_s4  ;;  %v2575_v21 = vld.sshfl [vmem:[%s4034_s3 + $0x5c] sm:$0x33 pattern:$0x76325410] }
 0x4d5   : > { %v1670_v10 = vadd.f32 %v1668_v38, %v1574_v54  ;;  %v1671_v45 = vadd.f32 %v1669_v29, %v1575_v56  ;;  %v3543_v7 = vpop.permute.xlu0 %1833  ;;  %v1675_v30 = vpop.permute.xlu1 %1674  ;;  %v1809_v29 = vcombine.high %v2575_v21, %v2575_v21 }
 0x4d6   : > { %v1677_v2 = vsel %vm1676_vm6, %v3481_v8, %v1675_v30  ;;  %v1678_v49 = vsel %vm1676_vm6, %v1675_v30, %v3481_v8  ;;  %vm2077_vm6 = vcmp.lt.s32.totalorder %v3320_v51, 99 }
 0x4d7   : > { %v1692_v28 = vmul.f32 %v2565_v60, %v1678_v49  ;;  %v1693_v14 = vmul.f32 %v1689_v32, %v1677_v2  ;;  %2387 = vrot.lane.b32.xlu1 %v3244_v25, %s2863_s25  ;;  %v2579_v32 = vld.sshfl [vmem:[%s4034_s3 + $0x64] sm:$0x33 pattern:$0x76325410]  ;;  %s2630_s25 = sshll.u32 %s4069_s21, 6 }
 0x4d8   : > { %s225_s28 = scalar_lea.vmem %s4036_s5, %s2630_s25 }
 0x4d9   : > { %v1694_v53 = vadd.f32 %v1692_v28, %v1598_v23  ;;  %v1695_v54 = vadd.f32 %v1693_v14, %v1599_v34  ;;  %v3553_v56 = vpop.permute.xlu0 %1857  ;;  %v1699_v1 = vpop.permute.xlu1 %1698  ;;  %v1850_v14 = vcombine.high %v2579_v32, %v2579_v32 }
 0x4da   : > { %v1701_v4 = vsel %vm1700_vm7, %v3493_v15, %v1699_v1  ;;  %v1702_v8 = vsel %vm1700_vm7, %v1699_v1, %v3493_v15  ;;  %vm2101_vm7 = vcmp.lt.s32.totalorder %v3320_v51, 98 }
 0x4db   : > { %v1716_v20 = vmul.f32 %v2567_v5, %v1702_v8  ;;  %v1717_v6 = vmul.f32 %v1713_v43, %v1701_v4  ;;  %v2581_v43 = vld.sshfl [vmem:[%s4034_s3 + $0x68] sm:$0x33 pattern:$0x76325410] }
 0x4dd   : > { %v1718_v22 = vadd.f32 %v1716_v20, %v1622_v18  ;;  %v1719_v31 = vadd.f32 %v1717_v6, %v1623_v47  ;;  %v3561_v23 = vpop.permute.xlu0 %1881  ;;  %v1723_v34 = vpop.permute.xlu1 %1722  ;;  %v1874_v6 = vcombine.high %v2581_v43, %v2581_v43 }
 0x4de   : > { %v1725_v33 = vsel %vm1724_vm8, %v3503_v61, %v1723_v34  ;;  %v1726_v36 = vsel %vm1724_vm8, %v1723_v34, %v3503_v61  ;;  %vm2125_vm8 = vcmp.lt.s32.totalorder %v3320_v51, 97 }
 0x4df   : > { %v1740_v39 = vmul.f32 %v2569_v44, %v1726_v36  ;;  %v1741_v15 = vmul.f32 %v1737_v9, %v1725_v33  ;;  %v2583_v9 = vld.sshfl [vmem:[%s4034_s3 + $0x6c] sm:$0x33 pattern:$0x76325410] }
 0x4e1   : > { %v3569_v17 = vadd.f32 %v1740_v39, %v1646_v13  ;;  %v3571_v18 = vadd.f32 %v1741_v15, %v1647_v3  ;;  %v3573_v47 = vpop.permute.xlu0 %1905  ;;  %v1747_v0 = vpop.permute.xlu1 %1746 }
 0x4e2   : > { %v1749_v57 = vsel %vm1748_vm9, %v3513_v37, %v1747_v0  ;;  %v1750_v61 = vsel %vm1748_vm9, %v1747_v0, %v3513_v37  ;;  %vm2149_vm9 = vcmp.lt.s32.totalorder %v3320_v51, 96 }
 0x4e3   : > { %v1764_v48 = vmul.f32 %v2571_v19, %v1750_v61  ;;  %v1765_v41 = vmul.f32 %v1761_v46, %v1749_v57  ;;  %v1898_v46 = vcombine.high %v2583_v9, %v2583_v9 }
 0x4e5   : > { %v1766_v60 = vadd.f32 %v1764_v48, %v1670_v10  ;;  %v1767_v13 = vadd.f32 %v1765_v41, %v1671_v45  ;;  %v3581_v3 = vpop.permute.xlu0 %1929  ;;  %v1771_v11 = vpop.permute.xlu1 %1770 }
 0x4e6   : > { %v1773_v35 = vsel %vm1772_vm10, %v3523_v40, %v1771_v11  ;;  %v1774_v27 = vsel %vm1772_vm10, %v1771_v11, %v3523_v40  ;;  %v2587_v11 = vld.sshfl [vmem:[%s4034_s3 + $0x74] sm:$0x33 pattern:$0x76325410]  ;;  %vm2173_vm10 = vcmp.lt.s32.totalorder %v3320_v51, 95 }
 0x4e7   : > { %v1788_v38 = vmul.f32 %v2573_v26, %v1774_v27  ;;  %v1789_v37 = vmul.f32 %v1785_v42, %v1773_v35  ;;  %v2585_v26 = vld.sshfl [vmem:[%s4034_s3 + $0x70] sm:$0x33 pattern:$0x76325410] }
 0x4e9   : > { %v1790_v5 = vadd.f32 %v1788_v38, %v1694_v53  ;;  %v1791_v30 = vadd.f32 %v1789_v37, %v1695_v54  ;;  %v3589_v10 = vpop.permute.xlu0 %1953  ;;  %v1795_v45 = vpop.permute.xlu1 %1794 }
 0x4ea   : > { %v1797_v2 = vsel %vm1796_vm11, %v3533_v12, %v1795_v45  ;;  %v1798_v49 = vsel %vm1796_vm11, %v1795_v45, %v3533_v12  ;;  %vm2197_vm11 = vcmp.lt.s32.totalorder %v3320_v51, 94 }
 0x4eb   : > { %v1812_v28 = vmul.f32 %v2575_v21, %v1798_v49  ;;  %v1813_v40 = vmul.f32 %v1809_v29, %v1797_v2 }
 0x4ed   : > { %v1814_v44 = vadd.f32 %v1812_v28, %v1718_v22  ;;  %v1815_v1 = vadd.f32 %v1813_v40, %v1719_v31  ;;  %v3597_v53 = vpop.permute.xlu0 %1977  ;;  %v1836_v54 = vpop.permute.xlu1 %1835 }
 0x4ee   : > { %v1838_v4 = vsel %vm1837_vm12, %v3543_v7, %v1836_v54  ;;  %v1839_v8 = vsel %vm1837_vm12, %v1836_v54, %v3543_v7  ;;  %v2577_v7 = vld.sshfl [vmem:[%s4034_s3 + $0x60] sm:$0x33 pattern:$0x76325410]  ;;  %vm2245_vm12 = vcmp.lt.s32.totalorder %v3320_v51, 83 }
 0x4ef   : > { %v1853_v20 = vmul.f32 %v2579_v32, %v1838_v4  ;;  %v1854_v12 = vmul.f32 %v1850_v14, %v1839_v8  ;;  %v1826_v41 = vcombine.high %v2577_v7, %v2577_v7 }
 0x4f1   : > { %v1855_v19 = vadd.f32 %v1853_v20, %v1766_v60  ;;  %v1856_v34 = vadd.f32 %v1854_v12, %v1767_v13  ;;  %v3605_v22 = vpop.permute.xlu0 %2001  ;;  %v1860_v31 = vpop.permute.xlu1 %1859  ;;  %v1922_v13 = vcombine.high %v2585_v26, %v2585_v26  ;;  %v1830_v37 = vmul.f32 %v1826_v41, %v3244_v25  ;;  %v2589_v25 = vld.sshfl [vmem:[%s4034_s3 + $0x78] sm:$0x33 pattern:$0x76325410] }
 0x4f2   : > { %v1862_v33 = vsel %vm1861_vm13, %v3553_v56, %v1860_v31  ;;  %v1863_v36 = vsel %vm1861_vm13, %v1860_v31, %v3553_v56  ;;  %vm2269_vm13 = vcmp.lt.s32.totalorder %v3320_v51, 82 }
 0x4f3   : > { %v1877_v39 = vmul.f32 %v2581_v43, %v1862_v33  ;;  %v1878_v15 = vmul.f32 %v1874_v6, %v1863_v36  ;;  %v1832_v45 = vadd.f32 %v1830_v37, %v3571_v18  ;;  %v3706_v37 = vld.sshfl [vmem:[%s4034_s3 + $0x8c] sm:$0x33 pattern:$0x76325410] }
 0x4f5   : > { %v1879_v0 = vadd.f32 %v1877_v39, %v1790_v5  ;;  %v1880_v57 = vadd.f32 %v1878_v15, %v1791_v30  ;;  %v3616_v61 = vpop.permute.xlu0 %2025  ;;  %v1884_v48 = vpop.permute.xlu1 %1883  ;;  %v1946_v30 = vcombine.high %v2587_v11, %v2587_v11 }
 0x4f6   : > { %v1886_v56 = vsel %vm1885_vm14, %v3561_v23, %v1884_v48  ;;  %v1887_v42 = vsel %vm1885_vm14, %v1884_v48, %v3561_v23  ;;  %v1829_v23 = vmul.f32 %v2577_v7, %v3240_v24  ;;  %vm2221_vm14 = vcmp.lt.s32.totalorder %v3320_v51, 93 }
 0x4f7   : > { %v1901_v21 = vmul.f32 %v2583_v9, %v1886_v56  ;;  %v1902_v60 = vmul.f32 %v1898_v46, %v1887_v42  ;;  %v2591_v56 = vld.sshfl [vmem:[%s4034_s3 + $0x7c] sm:$0x33 pattern:$0x76325410] }
 0x4f8   : > { %v1831_v2 = vadd.f32 %v1829_v23, %v3569_v17  ;;  %v1970_v17 = vcombine.high %v2589_v25, %v2589_v25  ;;  %v3716_v23 = vld.sshfl [vmem:[%s4034_s3 + $0x94] sm:$0x33 pattern:$0x76325410] }
 0x4f9   : > { %v3624_v35 = vadd.f32 %v1901_v21, %v1814_v44  ;;  %v3626_v27 = vadd.f32 %v1902_v60, %v1815_v1  ;;  %v3628_v38 = vpop.permute.xlu0 %2049  ;;  %v1908_v29 = vpop.permute.xlu1 %1907  ;;  %v2593_v60 = vld.sshfl [vmem:[%s4034_s3 + $0x80] sm:$0x33 pattern:$0x76325410] }
 0x4fa   : > { %v1910_v32 = vsel %vm1909_vm15, %v3573_v47, %v1908_v29  ;;  %v1911_v5 = vsel %vm1909_vm15, %v1908_v29, %v3573_v47  ;;  %v3711_v29 = vld.sshfl [vmem:[%s4034_s3 + $0x90] sm:$0x33 pattern:$0x76325410]  ;;  %vm2341_vm15 = vcmp.lt.s32.totalorder %v3320_v51, 79 }
 0x4fb   : > { %v1925_v49 = vmul.f32 %v2585_v26, %v1910_v32  ;;  %v1926_v28 = vmul.f32 %v1922_v13, %v1911_v5  ;;  %v3696_v13 = vld.sshfl [vmem:[%s4034_s3 + $0x84] sm:$0x33 pattern:$0x76325410] }
 0x4fc   : > { %v3721_v32 = vld.sshfl [vmem:[%s4034_s3 + $0x98] sm:$0x33 pattern:$0x76325410] }
 0x4fd   : > { %v3640_v40 = vadd.f32 %v1925_v49, %v1831_v2  ;;  %v3642_v24 = vadd.f32 %v1926_v28, %v1832_v45  ;;  %v3644_v14 = vpop.permute.xlu0 %2073  ;;  %v1932_v47 = vpop.permute.xlu1 %1931  ;;  %v3729_v45 = vld.sshfl [vmem:[%s4034_s3 + $0x9c] sm:$0x33 pattern:$0x76325410]  ;;  %v2018_v2 = vcombine.high %v2593_v60, %v2593_v60  ;;  %v2042_v49 = vcombine.high %v3696_v13, %v3696_v13 }
 0x4fe   : > { %v1934_v43 = vsel %vm1933_vm0, %v3581_v3, %v1932_v47  ;;  %v1935_v44 = vsel %vm1933_vm0, %v1932_v47, %v3581_v3  ;;  %vm2293_vm0 = vcmp.lt.s32.totalorder %v3320_v51, 81 }
 0x4ff   : > { %v1949_v18 = vmul.f32 %v2587_v11, %v1934_v43  ;;  %v1950_v1 = vmul.f32 %v1946_v30, %v1935_v44  ;;  %v3701_v11 = vld.sshfl [vmem:[%s4034_s3 + $0x88] sm:$0x33 pattern:$0x76325410]  ;;  %v1994_v30 = vcombine.high %v2591_v56, %v2591_v56 }
 0x500   : > { %v2066_v47 = vcombine.high %v3701_v11, %v3701_v11  ;;  %v3751_v44 = vld.sshfl [vmem:[%s4034_s3 + $0xa4] sm:$0x33 pattern:$0x76325410] }
 0x501   : > { %v3649_v54 = vadd.f32 %v1949_v18, %v1855_v19  ;;  %v3651_v4 = vadd.f32 %v1950_v1, %v1856_v34  ;;  %v3653_v8 = vpop.permute.xlu0 %2097  ;;  %v1956_v20 = vpop.permute.xlu1 %1955  ;;  %v3756_v18 = vld.sshfl [vmem:[%s4034_s3 + $0xa8] sm:$0x33 pattern:$0x76325410] }
 0x502   : > { %v1958_v12 = vsel %vm1957_vm1, %v3589_v10, %v1956_v20  ;;  %v1959_v6 = vsel %vm1957_vm1, %v1956_v20, %v3589_v10  ;;  %v3761_v1 = vld.sshfl [vmem:[%s4034_s3 + $0xac] sm:$0x33 pattern:$0x76325410]  ;;  %v2258_v50 = vcombine.high %v3756_v18, %v3756_v18  ;;  %vm2317_vm1 = vcmp.lt.s32.totalorder %v3320_v51, 80 }
 0x503   : > { %v1973_v9 = vmul.f32 %v2589_v25, %v1958_v12  ;;  %v1974_v31 = vmul.f32 %v1970_v17, %v1959_v6  ;;  %v3740_v25 = vld.sshfl [vmem:[%s4034_s3 + $0xa0] sm:$0x33 pattern:$0x76325410] }
 0x504   : > { %v3793_v12 = vld.sshfl [vmem:[%s4034_s3 + $0xb8] sm:$0x33 pattern:$0x76325410] }
 0x505   : > { %v3657_v33 = vadd.f32 %v1973_v9, %v1879_v0  ;;  %v3659_v3 = vadd.f32 %v1974_v31, %v1880_v57  ;;  %v1980_v36 = vpop.permute.xlu1 %1979  ;;  %v3661_v7 = vpop.permute.xlu0 %2121  ;;  %v3777_v9 = vld.sshfl [vmem:[%s4034_s3 + $0xb0] sm:$0x33 pattern:$0x76325410]  ;;  %v2138_v31 = vcombine.high %v3716_v23, %v3716_v23 }
 0x506   : > { %v1982_v17 = vsel %vm1981_vm2, %v3597_v53, %v1980_v36  ;;  %v1983_v20 = vsel %vm1981_vm2, %v1980_v36, %v3597_v53  ;;  %v3788_v36 = vld.sshfl [vmem:[%s4034_s3 + $0xb4] sm:$0x33 pattern:$0x76325410]  ;;  %vm2365_vm2 = vcmp.lt.s32.totalorder %v3320_v51, 78 }
 0x507   : > { %v1997_v55 = vmul.f32 %v2591_v56, %v1982_v17  ;;  %v1998_v59 = vmul.f32 %v1994_v30, %v1983_v20  ;;  %v2354_v17 = vcombine.high %v3793_v12, %v3793_v12 }
 0x509   : > { %v2004_v19 = vpop.permute.xlu1 %2003  ;;  %v3663_v39 = vpop.permute.xlu0 %2145 }
 0x50a   : > { %v2006_v43 = vsel %vm2005_vm3, %v3605_v22, %v2004_v19  ;;  %v2007_v63 = vsel %vm2005_vm3, %v2004_v19, %v3605_v22  ;;  %v3815_v22 = vld.sshfl [vmem:[%s4034_s3 + $0xc0] sm:$0x33 pattern:$0x76325410]  ;;  %vm2389_vm3 = vcmp.lt.s32.totalorder %v3320_v51, 77 }
 0x50b   : > { %v2021_v20 = vmul.f32 %v2593_v60, %v2006_v43  ;;  %v2022_v62 = vmul.f32 %v2018_v2, %v2007_v63  ;;  %v2402_v60 = vcombine.high %v3815_v22, %v3815_v22  ;;  %v1999_v2 = vadd.f32 %v1997_v55, %v3624_v35 }
 0x50c   : > { %v2000_v43 = vadd.f32 %v1998_v59, %v3626_v27 }
 0x50d   : > { %v3665_v34 = vpop.permute.xlu1 %2027  ;;  %v3669_v46 = vpop.permute.xlu0 %2169  ;;  %v2023_v27 = vadd.f32 %v2021_v20, %v3640_v40 }
 0x50e   : > { %v2030_v52 = vsel %vm2029_vm4, %v3616_v61, %v3665_v34  ;;  %v2031_v53 = vsel %vm2029_vm4, %v3665_v34, %v3616_v61  ;;  %vm2415_vm4 = vcmask 1041408  }
 0x50f   : > { %v2045_v30 = vmul.f32 %v3696_v13, %v2030_v52  ;;  %v2046_v63 = vmul.f32 %v2042_v49, %v2031_v53 }
 0x511   : > { %v3667_v15 = vpop.permute.xlu1 %2051  ;;  %v3673_v10 = vpop.permute.xlu0 %2193  ;;  %v2048_v49 = vadd.f32 %v2046_v63, %v3651_v4 }
 0x512   : > { %v2054_v61 = vsel %vm2053_vm5, %v3628_v38, %v3667_v15  ;;  %v2055_v34 = vsel %vm2053_vm5, %v3667_v15, %v3628_v38  ;;  %v2024_v38 = vadd.f32 %v2022_v62, %v3642_v24 }
 0x515   : > { %v3671_v26 = vpop.permute.xlu1 %2075  ;;  %v3679_v48 = vpop.permute.xlu0 %2217 }
 0x516   : > { %v2078_v55 = vsel %vm2077_vm6, %v3644_v14, %v3671_v26  ;;  %v2079_v59 = vsel %vm2077_vm6, %v3671_v26, %v3644_v14  ;;  %v2069_v14 = vmul.f32 %v3701_v11, %v2054_v61  ;;  %v2070_v26 = vmul.f32 %v2066_v47, %v2055_v34 }
 0x519   : > { %v3675_v0 = vpop.permute.xlu1 %2099  ;;  %v3686_v42 = vpop.permute.xlu0 %2241 }
 0x51a   : > { %v2102_v52 = vsel %vm2101_vm7, %v3653_v8, %v3675_v0  ;;  %v2103_v15 = vsel %vm2101_vm7, %v3675_v0, %v3653_v8  ;;  %v2093_v8 = vmul.f32 %v3706_v37, %v2078_v55  ;;  %v4051_v0 = vcombine.high %v3706_v37, %v3706_v37 }
 0x51b   : > { %v2117_v47 = vmul.f32 %v3711_v29, %v2102_v52  ;;  %v4052_v37 = vcombine.high %v3711_v29, %v3711_v29  ;;  %v4054_v55 = vcombine.high %v3729_v45, %v3729_v45 }
 0x51c   : > { %v2094_v13 = vmul.f32 %v4051_v0, %v2079_v59 }
 0x51d   : > { %v3677_v57 = vpop.permute.xlu1 %2123  ;;  %v3735_v28 = vpop.permute.xlu0 %2265  ;;  %v2118_v53 = vmul.f32 %v4052_v37, %v2103_v15 }
 0x51e   : > { %v2126_v62 = vsel %vm2125_vm8, %v3661_v7, %v3677_v57  ;;  %v2127_v40 = vsel %vm2125_vm8, %v3677_v57, %v3661_v7  ;;  %v2047_v57 = vadd.f32 %v2045_v30, %v3649_v54  ;;  %v2095_v30 = vadd.f32 %v2093_v8, %v1999_v2 }
 0x51f   : > { %v2141_v61 = vmul.f32 %v3716_v23, %v2126_v62  ;;  %v2142_v34 = vmul.f32 %v2138_v31, %v2127_v40  ;;  %v2096_v63 = vadd.f32 %v2094_v13, %v2000_v43  ;;  %v4055_v43 = vcombine.high %v3740_v25, %v3740_v25 }
 0x521   : > { %v3681_v41 = vpop.permute.xlu1 %2147  ;;  %v3817_v19 = vpop.permute.xlu0 %2289 }
 0x522   : > { %v2150_v11 = vsel %vm2149_vm9, %v3663_v39, %v3681_v41  ;;  %v2151_v7 = vsel %vm2149_vm9, %v3681_v41, %v3663_v39  ;;  %v4053_v41 = vcombine.high %v3721_v32, %v3721_v32 }
 0x523   : > { %v2165_v4 = vmul.f32 %v3721_v32, %v2150_v11 }
 0x524   : > { %v2166_v29 = vmul.f32 %v4053_v41, %v2151_v7  ;;  %v4058_v41 = vcombine.high %v3777_v9, %v3777_v9 }
 0x525   : > { %v3688_v21 = vpop.permute.xlu1 %2171  ;;  %v3884_v24 = vpop.permute.xlu0 %2313 }
 0x526   : > { %v2174_v39 = vsel %vm2173_vm10, %v3669_v46, %v3688_v21  ;;  %v2175_v54 = vsel %vm2173_vm10, %v3688_v21, %v3669_v46  ;;  %v2071_v46 = vadd.f32 %v2069_v14, %v3657_v33  ;;  %v2072_v21 = vadd.f32 %v2070_v26, %v3659_v3 }
 0x527   : > { %v2189_v32 = vmul.f32 %v3729_v45, %v2174_v39  ;;  %v2190_v59 = vmul.f32 %v4054_v55, %v2175_v54  ;;  %v2120_v3 = vadd.f32 %v2118_v53, %v2024_v38  ;;  %v2143_v45 = vadd.f32 %v2141_v61, %v2047_v57 }
 0x528   : > { %v2144_v26 = vadd.f32 %v2142_v34, %v2048_v49  ;;  %v2167_v62 = vadd.f32 %v2165_v4, %v2071_v46  ;;  %v2168_v40 = vadd.f32 %v2166_v29, %v2072_v21  ;;  %v4056_v49 = vcombine.high %v3761_v1, %v3761_v1 }
 0x529   : > { %v3723_v5 = vpop.permute.xlu1 %2195  ;;  %v2338_v52 = vpop.permute.xlu0 %2337  ;;  %v2192_v38 = vadd.f32 %v2190_v59, %v2096_v63  ;;  %v4057_v53 = vcombine.high %v3751_v44, %v3751_v44 }
 0x52a   : > { %v2198_v23 = vsel %vm2197_vm11, %v3673_v10, %v3723_v5  ;;  %v2199_v31 = vsel %vm2197_vm11, %v3723_v5, %v3673_v10  ;;  %v2119_v5 = vadd.f32 %v2117_v47, %v2023_v27  ;;  %v2191_v27 = vadd.f32 %v2189_v32, %v2095_v30 }
 0x52b   : > { %v2213_v2 = vmul.f32 %v3740_v25, %v2198_v23  ;;  %v2214_v14 = vmul.f32 %v4055_v43, %v2199_v31 }
 0x52d   : > { %v3772_v6 = vpop.permute.xlu1 %2219  ;;  %v2215_v13 = vadd.f32 %v2213_v2, %v2119_v5  ;;  %v2216_v11 = vadd.f32 %v2214_v14, %v2120_v3 }
 0x52e   : > { %v2222_v0 = vsel %vm2221_vm14, %v3679_v48, %v3772_v6 }
 0x52f   : > { %v2237_v37 = vmul.f32 %v3751_v44, %v2222_v0 }
 0x531   : > { %v2244_v56 = vpop.permute.xlu1 %2243  ;;  %v2239_v30 = vadd.f32 %v2237_v37, %v2143_v45 }
 0x532   : > { %v2246_v15 = vsel %vm2245_vm12, %v3686_v42, %v2244_v56  ;;  %v2247_v10 = vsel %vm2245_vm12, %v2244_v56, %v3686_v42 }
 0x533   : > { %v2261_v8 = vmul.f32 %v3756_v18, %v2246_v15  ;;  %v2262_v42 = vmul.f32 %v2258_v50, %v2247_v10  ;;  %v2223_v50 = vsel %vm2221_vm14, %v3772_v6, %v3679_v48 }
 0x534   : > { %v2238_v61 = vmul.f32 %v4057_v53, %v2223_v50 }
 0x535   : > { %v2268_v35 = vpop.permute.xlu1 %2267  ;;  %v2263_v34 = vadd.f32 %v2261_v8, %v2167_v62  ;;  %v2264_v39 = vadd.f32 %v2262_v42, %v2168_v40 }
 0x536   : > { %v2270_v56 = vsel %vm2269_vm13, %v3735_v28, %v2268_v35  ;;  %v2271_v25 = vsel %vm2269_vm13, %v2268_v35, %v3735_v28  ;;  %v2362_v35 = vpop.permute.xlu0 %2361  ;;  %v2240_v63 = vadd.f32 %v2238_v61, %v2144_v26 }
 0x537   : > { %v2285_v57 = vmul.f32 %v3761_v1, %v2270_v56  ;;  %v2286_v47 = vmul.f32 %v4056_v49, %v2271_v25  ;;  %v2431_v49 = vstv %s2430_s24 }
 0x539   : > { %v2292_v20 = vpop.permute.xlu1 %2291  ;;  %v2288_v46 = vadd.f32 %v2286_v47, %v2192_v38 }
 0x53a   : > { %v2294_v48 = vsel %vm2293_vm0, %v3817_v19, %v2292_v20  ;;  %v2295_v6 = vsel %vm2293_vm0, %v2292_v20, %v3817_v19  ;;  %v2386_v59 = vpop.permute.xlu0 %2385 }
 0x53b   : > { %v2309_v44 = vmul.f32 %v3777_v9, %v2294_v48  ;;  %v2310_v29 = vmul.f32 %v4058_v41, %v2295_v6  ;;  %v4060_v9 = vcombine.high %v3788_v36, %v3788_v36 }
 0x53d   : > { %v2316_v33 = vpop.permute.xlu1 %2315  ;;  %v2311_v3 = vadd.f32 %v2309_v44, %v2215_v13  ;;  %v2312_v2 = vadd.f32 %v2310_v29, %v2216_v11  ;;  %v4061_v44 = vld [vmem:[#allocation8_spill] sm:$0xff]  ;;  %v4062_v29 = vld [vmem:[#allocation3_spill] sm:$0xff] }
 0x53e   : > { %v2318_v1 = vsel %vm2317_vm1, %v3884_v24, %v2316_v33  ;;  %v2319_v54 = vsel %vm2317_vm1, %v2316_v33, %v3884_v24  ;;  %v2287_v24 = vadd.f32 %v2285_v57, %v2191_v27 }
 0x53f   : > { %v2333_v32 = vmul.f32 %v3788_v36, %v2318_v1  ;;  %v2334_v55 = vmul.f32 %v4060_v9, %v2319_v54 }
 0x541   : > { %v2340_v18 = vpop.permute.xlu1 %2339  ;;  %v2335_v62 = vadd.f32 %v2333_v32, %v2239_v30  ;;  %v2336_v40 = vadd.f32 %v2334_v55, %v2240_v63  ;;  %v4066_v30 = vld [vmem:[#allocation4_spill] sm:$0xff]  ;;  %v4067_v32 = vld [vmem:[#allocation7_spill] sm:$0xff] }
 0x542   : > { %v2342_v7 = vsel %vm2341_vm15, %v2338_v52, %v2340_v18  ;;  %v2343_v28 = vsel %vm2341_vm15, %v2340_v18, %v2338_v52 }
 0x543   : > { %v2357_v4 = vmul.f32 %v3793_v12, %v2342_v7  ;;  %v2358_v19 = vmul.f32 %v2354_v17, %v2343_v28  ;;  %v4059_v12 = vcombine.high %v3807_v16, %v3807_v16 }
 0x545   : > { %v2364_v20 = vpop.permute.xlu1 %2363  ;;  %v2359_v52 = vadd.f32 %v2357_v4, %v2263_v34  ;;  %v2360_v15 = vadd.f32 %v2358_v19, %v2264_v39 }
 0x546   : > { %v2366_v23 = vsel %vm2365_vm2, %v2362_v35, %v2364_v20  ;;  %v2367_v31 = vsel %vm2365_vm2, %v2364_v20, %v2362_v35 }
 0x547   : > { %v2381_v21 = vmul.f32 %v3807_v16, %v2366_v23  ;;  %v2382_v17 = vmul.f32 %v4059_v12, %v2367_v31  ;;  %v4063_v31 = vld [vmem:[#allocation6_spill] sm:$0xff]  ;;  %v4065_v12 = vld [vmem:[#allocation9_spill] sm:$0xff] }
 0x549   : > { %v2383_v10 = vadd.f32 %v2381_v21, %v2287_v24  ;;  %v2384_v33 = vadd.f32 %v2382_v17, %v2288_v46  ;;  %v2388_v5 = vpop.permute.xlu1 %2387  ;;  %v4064_v46 = vld [vmem:[#allocation5_spill] sm:$0xff] }
 0x54a   : > { %v2390_v16 = vsel %vm2389_vm3, %v2386_v59, %v2388_v5  ;;  %v2391_v43 = vsel %vm2389_vm3, %v2388_v5, %v2386_v59 }
 0x54b   : > { %v2411_v14 = vadd.f32 %v2383_v10, %v2359_v52  ;;  %v2412_v45 = vadd.f32 %v2384_v33, %v2360_v15  ;;  %v2405_v26 = vmul.f32 %v3815_v22, %v2390_v16  ;;  %v2406_v36 = vmul.f32 %v2402_v60, %v2391_v43 }
 0x54d   : > { %v2407_v8 = vadd.f32 %v2405_v26, %v2311_v3  ;;  %v2408_v42 = vadd.f32 %v2406_v36, %v2312_v2 }
 0x54f   : > { %v2409_v56 = vadd.f32 %v2407_v8, %v2335_v62  ;;  %v2410_v25 = vadd.f32 %v2408_v42, %v2336_v40 }
 0x551   : > { %v2413_v27 = vadd.f32 %v2411_v14, %v2409_v56  ;;  %v2414_v38 = vadd.f32 %v2412_v45, %v2410_v25 }
 0x553   : > { %v2416_v0 = vsel %vm2415_vm4, %v2413_v27, 0.0  ;;  %v2423_v51 = vsel %vm2415_vm4, %v2414_v38, 0.0 }
 0x554   : > { %v2417_v50 = vrot.slane %v2416_v0, 4  ;;  %v2424_v18 = vrot.slane %v2423_v51, 4 }
 0x556   : > { %v2418_v13 = vadd.f32 %v2417_v50, %v2416_v0  ;;  %v2425_v11 = vadd.f32 %v2424_v18, %v2423_v51 }
 0x558   : > { %v2419_v7 = vrot.slane %v2418_v13, 2  ;;  %v2426_v28 = vrot.slane %v2425_v11, 2 }
 0x55a   : > { %v2420_v22 = vadd.f32 %v2419_v7, %v2418_v13  ;;  %v2427_v60 = vadd.f32 %v2426_v28, %v2425_v11 }
 0x55c   : > { %v2421_v35 = vrot.slane %v2420_v22, 1  ;;  %v2428_v57 = vrot.slane %v2427_v60, 1 }
 0x55e   : > { %v2422_v47 = vadd.f32 %v2421_v35, %v2420_v22  ;;  %v2429_v48 = vadd.f32 %v2428_v57, %v2427_v60 }
 0x560   : > { %v2432_v6 = vadd.f32 %v2431_v49, %v2422_v47  ;;  %v2433_v37 = vadd.f32 %v2431_v49, %v2429_v48 }
 0x562   : > { %v2626_v53 = vmul.f32 -1.442695, %v2432_v6  ;;  %v2627_v61 = vmul.f32 -1.442695, %v2433_v37 }
 0x564   : > { %2797 = vpow2.f32 %v2626_v53 }
 0x565   : > { %2799 = vpow2.f32 %v2627_v61 }
 0x56e   : > { %v2798_v34 = vpop.eup %2797 }
 0x56f   : > { %v2800_v39 = vpop.eup %2799  ;;  %v2440_v1 = vadd.f32 1.0, %v2798_v34 }
 0x570   : > { %v2441_v54 = vadd.f32 1.0, %v2800_v39 }
 0x571   : > { %2801 = vrcp.f32 %v2440_v1 }
 0x572   : > { %2803 = vrcp.f32 %v2441_v54 }
 0x57b   : > { %v2802_v4 = vpop.eup %2801 }
 0x57c   : > { %v2804_v19 = vpop.eup %2803  ;;  %v2446_v20 = vmul.f32 %v2802_v4, %v3207_v58  ;;  %v2448_v41 = vmul.f32 %v2802_v4, %v4061_v44  ;;  %v2450_v23 = vmul.f32 %v2802_v4, %v4062_v29  ;;  %v2452_v24 = vmul.f32 %v2802_v4, %v4063_v31 }
 0x57d   : > { %v2447_v21 = vmul.f32 %v2804_v19, %v4064_v46  ;;  %v2449_v17 = vmul.f32 %v2804_v19, %v4065_v12  ;;  %v2451_v63 = vmul.f32 %v2804_v19, %v4066_v30  ;;  %v2453_v9 = vmul.f32 %v2804_v19, %v4067_v32 }
 0x57e   : > { %2454 = vst [vmem:[%s225_s28] sm:$0xff] %v2446_v20  ;;  %2456 = vst [vmem:[%s225_s28 + $0x10] sm:$0xff] %v2448_v41 }
 0x57f   : > { %2458 = vst [vmem:[%s225_s28 + $0x20] sm:$0xff] %v2450_v23  ;;  %2460 = vst [vmem:[%s225_s28 + $0x30] sm:$0xff] %v2452_v24 }
 0x580   : > { %2455 = vst [vmem:[%s225_s28 + $0x8] sm:$0xff] %v2447_v21  ;;  %2457 = vst [vmem:[%s225_s28 + $0x18] sm:$0xff] %v2449_v17 }
 0x581   : > { %2459 = vst [vmem:[%s225_s28 + $0x28] sm:$0xff] %v2451_v63  ;;  %2461 = vst [vmem:[%s225_s28 + $0x38] sm:$0xff] %v2453_v9 }
 0x582 PF: > { %s16_s20 = sadd.s32 1, %s2811_s20  }
 0x583   : > { %p13_p4 = scmp.ge.s32.totalorder %s16_s20, 4  }
 0x585   :  { %15 = sbr.rel (!%p13_p4) target bundleno = 2 (0x2), region = 118 }

</bundles_post_ra>
